<compile_context>
chip_gen: v6e
topology: v6e:2x2x1
jax: 0.10.0
libtpu: 0.0.40
codegen_flags: <defaults>
</compile_context>

<pallas_src>
import functools

import jax
import jax.numpy as jnp
from jax.experimental import pallas as pl
from jax.experimental.pallas import tpu as pltpu

EPS = 1e-5


def _round_up(v, m):
    return (v + m - 1) // m * m


def _vmem_limit_bytes():
    """Per-generation VMEM request (v7x: 64 MiB physical, v5e/v6e: 128 MiB)."""
    cap = 128 * 1024 * 1024
    try:
        cap = int(pltpu.get_tpu_info().vmem_capacity_bytes)
    except Exception:
        pass
    return max(32 * 1024 * 1024, min(cap // 2, 64 * 1024 * 1024))


# -----------------------------------------------------------------------------
# Fused single-call path: whole block resident in VMEM (small/medium shapes).
# -----------------------------------------------------------------------------
def _fused_kernel(x_ref, w1_ref, w2_ref, g1_ref, b1_ref, g2_ref, b2_ref,
                  o_ref, xp_scr, h_scr, st_scr, *, B, L):
    inv_n = 1.0 / float(B * L)

    def conv(w_ref, xp):
        # kernel_size=3 conv as three (C,C)x(C,L) bf16 MXU matmuls (f32 acc).
        acc = jnp.dot(w_ref[0], xp[:, 0:L], preferred_element_type=jnp.float32)
        acc = acc + jnp.dot(w_ref[1], xp[:, 1:L + 1],
                            preferred_element_type=jnp.float32)
        acc = acc + jnp.dot(w_ref[2], xp[:, 2:L + 2],
                            preferred_element_type=jnp.float32)
        return acc

    # Staging buffer: pad columns 0 and L+1 stay zero (the convs' zero padding);
    # columns [1, L+1) are rewritten per batch row.
    xp_scr[...] = jnp.zeros_like(xp_scr)

    # -- conv1, accumulate per-channel sum -----------------------------------
    st_scr[...] = jnp.zeros_like(st_scr)

    @pl.loop(0, B)
    def _(b):
        xp_scr[:, 1:L + 1] = x_ref[b].astype(jnp.bfloat16)
        c1 = conv(w1_ref, xp_scr[...])
        h_scr[b] = c1
        st_scr[...] += jnp.sum(c1, axis=1, keepdims=True)

    mean1 = st_scr[...] * inv_n

    # -- centered (two-pass) variance: conv1 output already resident in VMEM --
    st_scr[...] = jnp.zeros_like(st_scr)

    @pl.loop(0, B)
    def _(b):
        d = h_scr[b] - mean1
        st_scr[...] += jnp.sum(d * d, axis=1, keepdims=True)

    scale1 = g1_ref[...] * jax.lax.rsqrt(st_scr[...] * inv_n + EPS)
    shift1 = b1_ref[...] - mean1 * scale1

    # -- BN1 + ReLU + conv2, accumulate per-channel sum ----------------------
    st_scr[...] = jnp.zeros_like(st_scr)

    @pl.loop(0, B)
    def _(b):
        a1 = jnp.maximum(h_scr[b] * scale1 + shift1, 0.0)
        xp_scr[:, 1:L + 1] = a1.astype(jnp.bfloat16)
        c2 = conv(w2_ref, xp_scr[...])
        h_scr[b] = c2                    # conv1 output no longer needed: reuse
        st_scr[...] += jnp.sum(c2, axis=1, keepdims=True)

    mean2 = st_scr[...] * inv_n

    st_scr[...] = jnp.zeros_like(st_scr)

    @pl.loop(0, B)
    def _(b):
        d = h_scr[b] - mean2
        st_scr[...] += jnp.sum(d * d, axis=1, keepdims=True)

    scale2 = g2_ref[...] * jax.lax.rsqrt(st_scr[...] * inv_n + EPS)
    shift2 = b2_ref[...] - mean2 * scale2

    # -- BN2 + residual (exact f32 identity) + ReLU ---------------------------
    @pl.loop(0, B)
    def _(b):
        o_ref[b] = jnp.maximum(h_scr[b] * scale2 + shift2 + x_ref[b], 0.0)


def _fused_forward(x, w1t, w2t, g1, b1, g2, b2, vmem_limit):
    B, C, L = x.shape
    vecs = [v.reshape(C, 1).astype(jnp.float32) for v in (g1, b1, g2, b2)]
    return pl.pallas_call(
        functools.partial(_fused_kernel, B=B, L=L),
        out_shape=jax.ShapeDtypeStruct((B, C, L), jnp.float32),
        scratch_shapes=[pltpu.VMEM((C, L + 2), jnp.bfloat16),   # conv staging
                        pltpu.VMEM((B, C, L), jnp.float32),     # c1 then c2
                        pltpu.VMEM((C, 1), jnp.float32)],       # stats
        compiler_params=pltpu.CompilerParams(vmem_limit_bytes=vmem_limit),
    )(x, w1t, w2t, *vecs)


# -----------------------------------------------------------------------------
# Tiled 3-pass fallback (training-mode BN needs two full statistic sweeps
# before the output can be produced; the cheap convs are recomputed instead of
# spilling full activations to HBM).
# -----------------------------------------------------------------------------
def _tap3(w_ref, xw, off, width):
    """k=3 conv as three (C,C)x(C,width) MXU matmuls on a halo window.

    Tap k consumes window columns [off+k, off+k+width)."""
    acc = jnp.dot(w_ref[0], xw[:, off:off + width],
                  preferred_element_type=jnp.float32)
    acc = acc + jnp.dot(w_ref[1], xw[:, off + 1:off + 1 + width],
                        preferred_element_type=jnp.float32)
    acc = acc + jnp.dot(w_ref[2], xw[:, off + 2:off + 2 + width],
                        preferred_element_type=jnp.float32)
    return acc


def _load_window(xrow_ref, tl):
    # (C, tl+4) halo window sliced from the resident padded batch row.
    start = pl.multiple_of(pl.program_id(1) * tl, 128)
    return xrow_ref[:, pl.ds(start, tl + 4)]


def _mask_pad_cols(y, tl, length):
    col = jax.lax.broadcasted_iota(jnp.int32, y.shape, 1) + pl.program_id(1) * tl
    return jnp.where(col < length, y, 0.0)


def _accumulate(st_ref, acc_ref, y):
    """Lane-dense stats: element-wise partial sums on the VPU each step, one
    cross-lane (XLU) reduction per batch row on the last L tile."""
    t = pl.program_id(1)

    @pl.when(t == 0)
    def _():
        acc_ref[...] = jnp.zeros_like(acc_ref)

    acc_ref[0] += y
    acc_ref[1] += y * y

    @pl.when(t == pl.num_programs(1) - 1)
    def _():
        st_ref[:, 0:1] = jnp.sum(acc_ref[0], axis=1, keepdims=True)
        st_ref[:, 1:2] = jnp.sum(acc_ref[1], axis=1, keepdims=True)


def _pass1_kernel(xrow_ref, w1_ref, st_ref, acc_ref, *, tl, length, masked):
    c1 = _tap3(w1_ref, _load_window(xrow_ref, tl), 1, tl)
    if masked:                    # ragged L: keep padded columns out of stats
        c1 = _mask_pad_cols(c1, tl, length)
    _accumulate(st_ref, acc_ref, c1)


def _bn1_conv2(xrow_ref, w1_ref, w2_ref, sc1_ref, sh1_ref, *, tl, length):
    # conv1 over an extended window (global cols t0-1 .. t0+tl) so conv2 has
    # its halo, fused BN1 (per-channel FMA) + ReLU, zero-mask outside [0, L)
    # (exactly conv2's zero padding), then conv2 over the tile.
    t0 = pl.program_id(1) * tl
    xw = _load_window(xrow_ref, tl)
    c1e = _tap3(w1_ref, xw, 0, tl + 2)                           # f32 (C, tl+2)
    a1e = jnp.maximum(c1e * sc1_ref[...] + sh1_ref[...], 0.0)
    col = jax.lax.broadcasted_iota(jnp.int32, a1e.shape, 1) + (t0 - 1)
    a1e = jnp.where((col >= 0) & (col < length), a1e, 0.0)
    return _tap3(w2_ref, a1e.astype(jnp.bfloat16), 0, tl), xw    # f32 (C, tl)


def _pass2_kernel(xrow_ref, w1_ref, w2_ref, sc1_ref, sh1_ref, st_ref, acc_ref,
                  *, tl, length, masked):
    c2, _ = _bn1_conv2(xrow_ref, w1_ref, w2_ref, sc1_ref, sh1_ref,
                       tl=tl, length=length)
    if masked:
        c2 = _mask_pad_cols(c2, tl, length)
    _accumulate(st_ref, acc_ref, c2)


def _pass3_kernel(xrow_ref, w1_ref, w2_ref, sc1_ref, sh1_ref, sc2_ref, sh2_ref,
                  o_ref, *, tl, length):
    c2, xw = _bn1_conv2(xrow_ref, w1_ref, w2_ref, sc1_ref, sh1_ref,
                        tl=tl, length=length)
    # Residual sourced from the window already resident in VMEM (bf16, well
    # within the bf16-matmul tolerance) instead of a separate f32 HBM stream.
    xid = xw[:, 2:2 + tl].astype(jnp.float32)
    o_ref[...] = jnp.maximum(c2 * sc2_ref[...] + sh2_ref[...] + xid, 0.0)


def _pick_tile(C, L, budget):
    """Largest lane-aligned L tile whose per-step VMEM estimate fits `budget`."""
    # TODO(synk): rows too long for a full bf16 (C, Lpad+4) row in VMEM would
    # need element-offset windows; not reached for realistic 1D shapes.
    tl = min(_round_up(L, 128), 2048)
    while True:
        lpad = _round_up(L, tl)
        est = (2 * C * (lpad + 4) * 2          # bf16 row, double-buffered
               + 4 * C * tl * 4                # out blocks + stats scratch
               + 8 * C * (tl + 4) * 4          # f32 temporaries headroom
               + 4 * 3 * C * C * 2)            # resident conv weights
        if est <= budget or tl == 128:
            return tl, lpad
        tl = max(128, tl // 2)


def _tiled_forward(x, w1t, w2t, g1, b1, g2, b2, tl, vmem_limit):
    B, C, L = x.shape
    if tl is None:
        tl, lpad = _pick_tile(C, L, budget=vmem_limit // 2)
    else:
        tl = max(128, _round_up(tl, 128))
        lpad = _round_up(L, tl)
    nT = lpad // tl
    n = float(B * L)
    masked = lpad != L

    # One pad + bf16 cast; each padded batch row (C, lpad+4) then stays
    # resident in VMEM across the whole L-tile axis of every pass.
    xrow = jnp.pad(x.astype(jnp.bfloat16), ((0, 0), (0, 0), (2, 2 + lpad - L)))

    grid = (B, nT)
    row_spec = pl.BlockSpec((None, C, lpad + 4), lambda b, t: (b, 0, 0))
    w_spec = pl.BlockSpec((3, C, C), lambda b, t: (0, 0, 0))        # resident
    vec_spec = pl.BlockSpec((C, 1), lambda b, t: (0, 0))            # resident
    st_spec = pl.BlockSpec((None, C, 2), lambda b, t: (b, 0, 0))    # per row
    st_shape = jax.ShapeDtypeStruct((B, C, 2), jnp.float32)
    out_spec = pl.BlockSpec((None, C, tl), lambda b, t: (b, 0, t))
    acc_scratch = [pltpu.VMEM((2, C, tl), jnp.float32)]

    # The L-tile axis carries the stats accumulator in passes 1-2 ("arbitrary")
    # but is fully independent in pass 3 ("parallel": v7x megacore can split
    # both axes there).
    cp_red = pltpu.CompilerParams(dimension_semantics=("parallel", "arbitrary"),
                                  vmem_limit_bytes=vmem_limit)
    cp_par = pltpu.CompilerParams(dimension_semantics=("parallel", "parallel"),
                                  vmem_limit_bytes=vmem_limit)

    def bn_coeffs(stats, gamma, beta):
        # Fold BN into one per-channel FMA: scale = g*rsqrt(var+eps),
        # shift = beta - mean*scale (f32, E[x^2]-E[x]^2 clamped at 0).
        tot = jnp.sum(stats, axis=0)                       # (C, 2)
        mean = tot[:, 0] / n
        var = jnp.maximum(tot[:, 1] / n - mean * mean, 0.0)
        scale = gamma * jax.lax.rsqrt(var + EPS)
        shift = beta - mean * scale
        return scale.reshape(C, 1), shift.reshape(C, 1)

    # Pass 1: conv1 -> per-channel (sum, sum^2) for BN1.
    stats1 = pl.pallas_call(
        functools.partial(_pass1_kernel, tl=tl, length=L, masked=masked),
        grid=grid,
        in_specs=[row_spec, w_spec],
        out_specs=st_spec,
        out_shape=st_shape,
        scratch_shapes=acc_scratch,
        compiler_params=cp_red,
    )(xrow, w1t)
    sc1, sh1 = bn_coeffs(stats1, g1, b1)

    # Pass 2: recompute conv1 (+halo), BN1+ReLU, conv2 -> stats for BN2.
    stats2 = pl.pallas_call(
        functools.partial(_pass2_kernel, tl=tl, length=L, masked=masked),
        grid=grid,
        in_specs=[row_spec, w_spec, w_spec, vec_spec, vec_spec],
        out_specs=st_spec,
        out_shape=st_shape,
        scratch_shapes=acc_scratch,
        compiler_params=cp_red,
    )(xrow, w1t, w2t, sc1, sh1)
    sc2, sh2 = bn_coeffs(stats2, g2, b2)

    # Pass 3: recompute, BN2, residual (from the resident window), ReLU.
    out = pl.pallas_call(
        functools.partial(_pass3_kernel, tl=tl, length=L),
        grid=grid,
        in_specs=[row_spec, w_spec, w_spec, vec_spec, vec_spec, vec_spec,
                  vec_spec],
        out_specs=out_spec,
        out_shape=jax.ShapeDtypeStruct((B, C, lpad), jnp.float32),
        compiler_params=cp_par,
    )(xrow, w1t, w2t, sc1, sh1, sc2, sh2)
    return out if lpad == L else out[:, :, :L]


# -----------------------------------------------------------------------------
# Public entry point + pure-JAX reference.
# -----------------------------------------------------------------------------
def block_forward(x, w1, g1, b1, w2, g2, b2, *, tl=None, force_tiled=False):
    """Forward pass of `Block` (training-mode BN), NCL layout throughout.

    x: (B, C, L) f32; w1, w2: (Cout=C, Cin=C, 3) PyTorch Conv1d weights;
    g*, b*: (C,) BatchNorm affine params.  Returns (B, C, L) f32.
    """
    B, C, L = x.shape
    w1t = jnp.transpose(w1, (2, 0, 1)).astype(jnp.bfloat16)   # (3, Cout, Cin)
    w2t = jnp.transpose(w2, (2, 0, 1)).astype(jnp.bfloat16)
    vmem_limit = _vmem_limit_bytes()

    # Fused single-kernel path when x, out, the activation scratch and f32
    # temporaries comfortably fit under the per-generation VMEM budget.
    fused_bytes = 3 * B * C * L * 4 + C * (L + 2) * 2 + 8 * C * L * 4
    if not force_tiled and fused_bytes <= vmem_limit // 2:
        return _fused_forward(x, w1t, w2t, g1, b1, g2, b2, vmem_limit)
    return _tiled_forward(x, w1t, w2t, g1, b1, g2, b2, tl, vmem_limit)


def block_reference(x, w1, g1, b1, w2, g2, b2):
    """Pure-JAX f32 reference with PyTorch Block (training-mode BN) semantics."""
    def conv1d(inp, w):                      # inp (B,C,L), w (Cout,Cin,3), pad=1
        L = inp.shape[-1]
        xp = jnp.pad(inp, ((0, 0), (0, 0), (1, 1)))
        return sum(jnp.einsum("oi,bil->bol", w[:, :, k], xp[:, :, k:k + L])
                   for k in range(3))

    def bn(y, g, b):
        m = jnp.mean(y, axis=(0, 2), keepdims=True)
        v = jnp.mean(jnp.square(y - m), axis=(0, 2), keepdims=True)
        return ((y - m) * jax.lax.rsqrt(v + EPS) * g.reshape(1, -1, 1)
                + b.reshape(1, -1, 1))

    h = jnp.maximum(bn(conv1d(x, w1), g1, b1), 0.0)
    h = bn(conv1d(h, w2), g2, b2)
    return jnp.maximum(h + x, 0.0)


if __name__ == "__main__":
    B, C, L = 2, 16, 512   # batch, channels (in == out, downsample=None), length

    key = jax.random.PRNGKey(0)
    ks = jax.random.split(key, 7)
    x = jax.random.normal(ks[0], (B, C, L), dtype=jnp.float32)
    # Conv weights in PyTorch layout (Cout, Cin, 3); BN affine params (C,).
    w1 = 0.1 * jax.random.normal(ks[1], (C, C, 3), dtype=jnp.float32)
    w2 = 0.1 * jax.random.normal(ks[2], (C, C, 3), dtype=jnp.float32)
    g1 = 1.0 + 0.1 * jax.random.normal(ks[3], (C,), dtype=jnp.float32)
    b1 = 0.1 * jax.random.normal(ks[4], (C,), dtype=jnp.float32)
    g2 = 1.0 + 0.1 * jax.random.normal(ks[5], (C,), dtype=jnp.float32)
    b2 = 0.1 * jax.random.normal(ks[6], (C,), dtype=jnp.float32)

    ref = block_reference(x, w1, g1, b1, w2, g2, b2)

    # Fused single-kernel path (default at this size).
    out = jax.block_until_ready(block_forward(x, w1, g1, b1, w2, g2, b2))
    assert out.shape == (B, C, L)
    # Tolerance accounts for bf16 MXU operands (f32 accumulation).
    assert jnp.allclose(out, ref, atol=5e-2, rtol=5e-2), (
        f"fused max abs err {float(jnp.max(jnp.abs(out - ref)))}")

    # Tiled multi-pass fallback (large-shape path), forced here for coverage
    # with several L tiles per batch row.
    out_t = jax.block_until_ready(
        block_forward(x, w1, g1, b1, w2, g2, b2, force_tiled=True, tl=128))
    assert out_t.shape == (B, C, L)
    assert jnp.allclose(out_t, ref, atol=5e-2, rtol=5e-2), (
        f"tiled max abs err {float(jnp.max(jnp.abs(out_t - ref)))}")

    print("KERNEL_OK")
</pallas_src>

<mosaic_0001>
module attributes {stable_mosaic.version = 11 : i64} {
  func.func @_fused_kernel(%arg0: memref<2x16x512xf32, #tpu.memory_space<vmem>>, %arg1: memref<3x16x16xbf16, #tpu.memory_space<vmem>>, %arg2: memref<3x16x16xbf16, #tpu.memory_space<vmem>>, %arg3: memref<16x1xf32, #tpu.memory_space<vmem>>, %arg4: memref<16x1xf32, #tpu.memory_space<vmem>>, %arg5: memref<16x1xf32, #tpu.memory_space<vmem>>, %arg6: memref<16x1xf32, #tpu.memory_space<vmem>>, %arg7: memref<2x16x512xf32, #tpu.memory_space<vmem>>, %arg8: memref<16x514xbf16, #tpu.memory_space<vmem>>, %arg9: memref<2x16x512xf32, #tpu.memory_space<vmem>>, %arg10: memref<16x1xf32, #tpu.memory_space<vmem>>) attributes {dimension_semantics = [], scalar_prefetch = 0 : i64, scratch_operands = 3 : i64, tpu.core_type = #tpu.core_type<tc>} {
    %cst = arith.constant 0.000000e+00 : bf16
    %0 = vector.broadcast %cst : bf16 to vector<16x514xbf16>
    %c0 = arith.constant 0 : index
    %c0_0 = arith.constant 0 : index
    %1 = vector.load %arg8[%c0, %c0_0] : memref<16x514xbf16, #tpu.memory_space<vmem>>, vector<16x514xbf16>
    tpu.vector_store %arg8[%c0, %c0_0], %0 {strides = array<i32>} : memref<16x514xbf16, #tpu.memory_space<vmem>>, vector<16x514xbf16>,
    %cst_1 = arith.constant 0.000000e+00 : f32
    %2 = vector.broadcast %cst_1 : f32 to vector<16x1xf32>
    %c0_2 = arith.constant 0 : index
    %c0_3 = arith.constant 0 : index
    %3 = vector.load %arg10[%c0_2, %c0_3] : memref<16x1xf32, #tpu.memory_space<vmem>>, vector<16x1xf32>
    tpu.vector_store %arg10[%c0_2, %c0_3], %2 {strides = array<i32>} : memref<16x1xf32, #tpu.memory_space<vmem>>, vector<16x1xf32>,
    %c0_i32 = arith.constant 0 : i32
    %c2_i32 = arith.constant 2 : i32
    %4 = arith.addi %c0_i32, %c2_i32 : i32
    %c1_i32 = arith.constant 1 : i32
    scf.for %arg11 = %c0_i32 to %4 step %c1_i32  : i32 {
      %c1_i32_52 = arith.constant 1 : i32
      %43 = arith.muli %arg11, %c1_i32_52 : i32
      %c0_i32_53 = arith.constant 0 : i32
      %44 = arith.addi %c0_i32_53, %43 : i32
      %45 = arith.index_cast %44 : i32 to index
      %c0_54 = arith.constant 0 : index
      %c0_55 = arith.constant 0 : index
      %46 = vector.load %arg0[%45, %c0_54, %c0_55] : memref<2x16x512xf32, #tpu.memory_space<vmem>>, vector<1x16x512xf32>
      %47 = vector.shape_cast %46 : vector<1x16x512xf32> to vector<16x512xf32>
      %48 = arith.truncf %47 : vector<16x512xf32> to vector<16x512xbf16>
      %c0_56 = arith.constant 0 : index
      %c1 = arith.constant 1 : index
      %49 = vector.load %arg8[%c0_56, %c1] : memref<16x514xbf16, #tpu.memory_space<vmem>>, vector<16x512xbf16>
      tpu.vector_store %arg8[%c0_56, %c1], %48 {strides = array<i32>} : memref<16x514xbf16, #tpu.memory_space<vmem>>, vector<16x512xbf16>,
      %c0_57 = arith.constant 0 : index
      %c0_58 = arith.constant 0 : index
      %50 = vector.load %arg8[%c0_57, %c0_58] : memref<16x514xbf16, #tpu.memory_space<vmem>>, vector<16x514xbf16>
      %c0_59 = arith.constant 0 : index
      %c0_60 = arith.constant 0 : index
      %c0_61 = arith.constant 0 : index
      %51 = vector.load %arg1[%c0_59, %c0_60, %c0_61] : memref<3x16x16xbf16, #tpu.memory_space<vmem>>, vector<1x16x16xbf16>
      %52 = vector.shape_cast %51 : vector<1x16x16xbf16> to vector<16x16xbf16>
      %53 = vector.extract_strided_slice %50 {offsets = [0, 0], sizes = [16, 512], strides = [1, 1]} : vector<16x514xbf16> to vector<16x512xbf16>
      %cst_62 = arith.constant dense<0.000000e+00> : vector<16x512xf32>
      %54 = tpu.matmul %52, %53, %cst_62 {dimension_numbers = #tpu.dot_dimension_numbers<[1], [0], [0], [1], [0, 0, 1, 1], [], []>} : vector<16x16xbf16>, vector<16x512xbf16>, vector<16x512xf32> -> vector<16x512xf32>
      %c1_63 = arith.constant 1 : index
      %c0_64 = arith.constant 0 : index
      %c0_65 = arith.constant 0 : index
      %55 = vector.load %arg1[%c1_63, %c0_64, %c0_65] : memref<3x16x16xbf16, #tpu.memory_space<vmem>>, vector<1x16x16xbf16>
      %56 = vector.shape_cast %55 : vector<1x16x16xbf16> to vector<16x16xbf16>
      %57 = vector.extract_strided_slice %50 {offsets = [0, 1], sizes = [16, 512], strides = [1, 1]} : vector<16x514xbf16> to vector<16x512xbf16>
      %cst_66 = arith.constant dense<0.000000e+00> : vector<16x512xf32>
      %58 = tpu.matmul %56, %57, %cst_66 {dimension_numbers = #tpu.dot_dimension_numbers<[1], [0], [0], [1], [0, 0, 1, 1], [], []>} : vector<16x16xbf16>, vector<16x512xbf16>, vector<16x512xf32> -> vector<16x512xf32>
      %59 = arith.addf %54, %58 : vector<16x512xf32>
      %c2 = arith.constant 2 : index
      %c0_67 = arith.constant 0 : index
      %c0_68 = arith.constant 0 : index
      %60 = vector.load %arg1[%c2, %c0_67, %c0_68] : memref<3x16x16xbf16, #tpu.memory_space<vmem>>, vector<1x16x16xbf16>
      %61 = vector.shape_cast %60 : vector<1x16x16xbf16> to vector<16x16xbf16>
      %62 = vector.extract_strided_slice %50 {offsets = [0, 2], sizes = [16, 512], strides = [1, 1]} : vector<16x514xbf16> to vector<16x512xbf16>
      %cst_69 = arith.constant dense<0.000000e+00> : vector<16x512xf32>
      %63 = tpu.matmul %61, %62, %cst_69 {dimension_numbers = #tpu.dot_dimension_numbers<[1], [0], [0], [1], [0, 0, 1, 1], [], []>} : vector<16x16xbf16>, vector<16x512xbf16>, vector<16x512xf32> -> vector<16x512xf32>
      %64 = arith.addf %59, %63 : vector<16x512xf32>
      %65 = arith.index_cast %44 : i32 to index
      %c0_70 = arith.constant 0 : index
      %c0_71 = arith.constant 0 : index
      %66 = vector.load %arg9[%65, %c0_70, %c0_71] : memref<2x16x512xf32, #tpu.memory_space<vmem>>, vector<1x16x512xf32>
      %67 = vector.shape_cast %66 : vector<1x16x512xf32> to vector<16x512xf32>
      %68 = vector.shape_cast %64 : vector<16x512xf32> to vector<1x16x512xf32>
      tpu.vector_store %arg9[%65, %c0_70, %c0_71], %68 {strides = array<i32>} : memref<2x16x512xf32, #tpu.memory_space<vmem>>, vector<1x16x512xf32>,
      %c0_72 = arith.constant 0 : index
      %c0_73 = arith.constant 0 : index
      %69 = vector.load %arg10[%c0_72, %c0_73] : memref<16x1xf32, #tpu.memory_space<vmem>>, vector<16x1xf32>
      %cst_74 = arith.constant dense<0.000000e+00> : vector<16xf32>
      %70 = vector.multi_reduction <add>, %64, %cst_74 [1] : vector<16x512xf32> to vector<16xf32>
      %71 = vector.shape_cast %70 : vector<16xf32> to vector<16x1xf32>
      %72 = arith.addf %69, %71 : vector<16x1xf32>
      %c0_75 = arith.constant 0 : index
      %c0_76 = arith.constant 0 : index
      %73 = vector.load %arg10[%c0_75, %c0_76] : memref<16x1xf32, #tpu.memory_space<vmem>>, vector<16x1xf32>
      tpu.vector_store %arg10[%c0_75, %c0_76], %72 {strides = array<i32>} : memref<16x1xf32, #tpu.memory_space<vmem>>, vector<16x1xf32>,
    }
    %c2_i32_4 = arith.constant 2 : i32
    %c0_5 = arith.constant 0 : index
    %c0_6 = arith.constant 0 : index
    %5 = vector.load %arg10[%c0_5, %c0_6] : memref<16x1xf32, #tpu.memory_space<vmem>>, vector<16x1xf32>
    %cst_7 = arith.constant 9.765625E-4 : f32
    %6 = vector.broadcast %cst_7 : f32 to vector<16x1xf32>
    %7 = arith.mulf %5, %6 : vector<16x1xf32>
    %cst_8 = arith.constant 0.000000e+00 : f32
    %8 = vector.broadcast %cst_8 : f32 to vector<16x1xf32>
    %c0_9 = arith.constant 0 : index
    %c0_10 = arith.constant 0 : index
    %9 = vector.load %arg10[%c0_9, %c0_10] : memref<16x1xf32, #tpu.memory_space<vmem>>, vector<16x1xf32>
    tpu.vector_store %arg10[%c0_9, %c0_10], %8 {strides = array<i32>} : memref<16x1xf32, #tpu.memory_space<vmem>>, vector<16x1xf32>,
    %c0_i32_11 = arith.constant 0 : i32
    %c2_i32_12 = arith.constant 2 : i32
    %10 = arith.addi %c0_i32_11, %c2_i32_12 : i32
    %c1_i32_13 = arith.constant 1 : i32
    scf.for %arg11 = %c0_i32_11 to %10 step %c1_i32_13  : i32 {
      %c1_i32_52 = arith.constant 1 : i32
      %43 = arith.muli %arg11, %c1_i32_52 : i32
      %c0_i32_53 = arith.constant 0 : i32
      %44 = arith.addi %c0_i32_53, %43 : i32
      %45 = arith.index_cast %44 : i32 to index
      %c0_54 = arith.constant 0 : index
      %c0_55 = arith.constant 0 : index
      %46 = vector.load %arg9[%45, %c0_54, %c0_55] : memref<2x16x512xf32, #tpu.memory_space<vmem>>, vector<1x16x512xf32>
      %47 = vector.shape_cast %46 : vector<1x16x512xf32> to vector<16x512xf32>
      %48 = vector.broadcast %7 : vector<16x1xf32> to vector<16x512xf32>
      %49 = arith.subf %47, %48 : vector<16x512xf32>
      %c0_56 = arith.constant 0 : index
      %c0_57 = arith.constant 0 : index
      %50 = vector.load %arg10[%c0_56, %c0_57] : memref<16x1xf32, #tpu.memory_space<vmem>>, vector<16x1xf32>
      %51 = arith.mulf %49, %49 : vector<16x512xf32>
      %cst_58 = arith.constant dense<0.000000e+00> : vector<16xf32>
      %52 = vector.multi_reduction <add>, %51, %cst_58 [1] : vector<16x512xf32> to vector<16xf32>
      %53 = vector.shape_cast %52 : vector<16xf32> to vector<16x1xf32>
      %54 = arith.addf %50, %53 : vector<16x1xf32>
      %c0_59 = arith.constant 0 : index
      %c0_60 = arith.constant 0 : index
      %55 = vector.load %arg10[%c0_59, %c0_60] : memref<16x1xf32, #tpu.memory_space<vmem>>, vector<16x1xf32>
      tpu.vector_store %arg10[%c0_59, %c0_60], %54 {strides = array<i32>} : memref<16x1xf32, #tpu.memory_space<vmem>>, vector<16x1xf32>,
    }
    %c2_i32_14 = arith.constant 2 : i32
    %c0_15 = arith.constant 0 : index
    %c0_16 = arith.constant 0 : index
    %11 = vector.load %arg3[%c0_15, %c0_16] : memref<16x1xf32, #tpu.memory_space<vmem>>, vector<16x1xf32>
    %c0_17 = arith.constant 0 : index
    %c0_18 = arith.constant 0 : index
    %12 = vector.load %arg10[%c0_17, %c0_18] : memref<16x1xf32, #tpu.memory_space<vmem>>, vector<16x1xf32>
    %cst_19 = arith.constant 9.765625E-4 : f32
    %13 = vector.broadcast %cst_19 : f32 to vector<16x1xf32>
    %14 = arith.mulf %12, %13 : vector<16x1xf32>
    %cst_20 = arith.constant 9.99999974E-6 : f32
    %15 = vector.broadcast %cst_20 : f32 to vector<16x1xf32>
    %16 = arith.addf %14, %15 : vector<16x1xf32>
    %17 = math.rsqrt %16 : vector<16x1xf32>
    %18 = arith.mulf %11, %17 : vector<16x1xf32>
    %c0_21 = arith.constant 0 : index
    %c0_22 = arith.constant 0 : index
    %19 = vector.load %arg4[%c0_21, %c0_22] : memref<16x1xf32, #tpu.memory_space<vmem>>, vector<16x1xf32>
    %20 = arith.mulf %7, %18 : vector<16x1xf32>
    %21 = arith.subf %19, %20 : vector<16x1xf32>
    %cst_23 = arith.constant 0.000000e+00 : f32
    %22 = vector.broadcast %cst_23 : f32 to vector<16x1xf32>
    %c0_24 = arith.constant 0 : index
    %c0_25 = arith.constant 0 : index
    %23 = vector.load %arg10[%c0_24, %c0_25] : memref<16x1xf32, #tpu.memory_space<vmem>>, vector<16x1xf32>
    tpu.vector_store %arg10[%c0_24, %c0_25], %22 {strides = array<i32>} : memref<16x1xf32, #tpu.memory_space<vmem>>, vector<16x1xf32>,
    %c0_i32_26 = arith.constant 0 : i32
    %c2_i32_27 = arith.constant 2 : i32
    %24 = arith.addi %c0_i32_26, %c2_i32_27 : i32
    %c1_i32_28 = arith.constant 1 : i32
    scf.for %arg11 = %c0_i32_26 to %24 step %c1_i32_28  : i32 {
      %c1_i32_52 = arith.constant 1 : i32
      %43 = arith.muli %arg11, %c1_i32_52 : i32
      %c0_i32_53 = arith.constant 0 : i32
      %44 = arith.addi %c0_i32_53, %43 : i32
      %45 = arith.index_cast %44 : i32 to index
      %c0_54 = arith.constant 0 : index
      %c0_55 = arith.constant 0 : index
      %46 = vector.load %arg9[%45, %c0_54, %c0_55] : memref<2x16x512xf32, #tpu.memory_space<vmem>>, vector<1x16x512xf32>
      %47 = vector.shape_cast %46 : vector<1x16x512xf32> to vector<16x512xf32>
      %48 = vector.broadcast %18 : vector<16x1xf32> to vector<16x512xf32>
      %49 = arith.mulf %47, %48 : vector<16x512xf32>
      %50 = vector.broadcast %21 : vector<16x1xf32> to vector<16x512xf32>
      %51 = arith.addf %49, %50 : vector<16x512xf32>
      %cst_56 = arith.constant 0.000000e+00 : f32
      %52 = vector.broadcast %cst_56 : f32 to vector<16x512xf32>
      %53 = arith.maximumf %51, %52 : vector<16x512xf32>
      %54 = arith.truncf %53 : vector<16x512xf32> to vector<16x512xbf16>
      %c0_57 = arith.constant 0 : index
      %c1 = arith.constant 1 : index
      %55 = vector.load %arg8[%c0_57, %c1] : memref<16x514xbf16, #tpu.memory_space<vmem>>, vector<16x512xbf16>
      tpu.vector_store %arg8[%c0_57, %c1], %54 {strides = array<i32>} : memref<16x514xbf16, #tpu.memory_space<vmem>>, vector<16x512xbf16>,
      %c0_58 = arith.constant 0 : index
      %c0_59 = arith.constant 0 : index
      %56 = vector.load %arg8[%c0_58, %c0_59] : memref<16x514xbf16, #tpu.memory_space<vmem>>, vector<16x514xbf16>
      %c0_60 = arith.constant 0 : index
      %c0_61 = arith.constant 0 : index
      %c0_62 = arith.constant 0 : index
      %57 = vector.load %arg2[%c0_60, %c0_61, %c0_62] : memref<3x16x16xbf16, #tpu.memory_space<vmem>>, vector<1x16x16xbf16>
      %58 = vector.shape_cast %57 : vector<1x16x16xbf16> to vector<16x16xbf16>
      %59 = vector.extract_strided_slice %56 {offsets = [0, 0], sizes = [16, 512], strides = [1, 1]} : vector<16x514xbf16> to vector<16x512xbf16>
      %cst_63 = arith.constant dense<0.000000e+00> : vector<16x512xf32>
      %60 = tpu.matmul %58, %59, %cst_63 {dimension_numbers = #tpu.dot_dimension_numbers<[1], [0], [0], [1], [0, 0, 1, 1], [], []>} : vector<16x16xbf16>, vector<16x512xbf16>, vector<16x512xf32> -> vector<16x512xf32>
      %c1_64 = arith.constant 1 : index
      %c0_65 = arith.constant 0 : index
      %c0_66 = arith.constant 0 : index
      %61 = vector.load %arg2[%c1_64, %c0_65, %c0_66] : memref<3x16x16xbf16, #tpu.memory_space<vmem>>, vector<1x16x16xbf16>
      %62 = vector.shape_cast %61 : vector<1x16x16xbf16> to vector<16x16xbf16>
      %63 = vector.extract_strided_slice %56 {offsets = [0, 1], sizes = [16, 512], strides = [1, 1]} : vector<16x514xbf16> to vector<16x512xbf16>
      %cst_67 = arith.constant dense<0.000000e+00> : vector<16x512xf32>
      %64 = tpu.matmul %62, %63, %cst_67 {dimension_numbers = #tpu.dot_dimension_numbers<[1], [0], [0], [1], [0, 0, 1, 1], [], []>} : vector<16x16xbf16>, vector<16x512xbf16>, vector<16x512xf32> -> vector<16x512xf32>
      %65 = arith.addf %60, %64 : vector<16x512xf32>
      %c2 = arith.constant 2 : index
      %c0_68 = arith.constant 0 : index
      %c0_69 = arith.constant 0 : index
      %66 = vector.load %arg2[%c2, %c0_68, %c0_69] : memref<3x16x16xbf16, #tpu.memory_space<vmem>>, vector<1x16x16xbf16>
      %67 = vector.shape_cast %66 : vector<1x16x16xbf16> to vector<16x16xbf16>
      %68 = vector.extract_strided_slice %56 {offsets = [0, 2], sizes = [16, 512], strides = [1, 1]} : vector<16x514xbf16> to vector<16x512xbf16>
      %cst_70 = arith.constant dense<0.000000e+00> : vector<16x512xf32>
      %69 = tpu.matmul %67, %68, %cst_70 {dimension_numbers = #tpu.dot_dimension_numbers<[1], [0], [0], [1], [0, 0, 1, 1], [], []>} : vector<16x16xbf16>, vector<16x512xbf16>, vector<16x512xf32> -> vector<16x512xf32>
      %70 = arith.addf %65, %69 : vector<16x512xf32>
      %71 = arith.index_cast %44 : i32 to index
      %c0_71 = arith.constant 0 : index
      %c0_72 = arith.constant 0 : index
      %72 = vector.load %arg9[%71, %c0_71, %c0_72] : memref<2x16x512xf32, #tpu.memory_space<vmem>>, vector<1x16x512xf32>
      %73 = vector.shape_cast %72 : vector<1x16x512xf32> to vector<16x512xf32>
      %74 = vector.shape_cast %70 : vector<16x512xf32> to vector<1x16x512xf32>
      tpu.vector_store %arg9[%71, %c0_71, %c0_72], %74 {strides = array<i32>} : memref<2x16x512xf32, #tpu.memory_space<vmem>>, vector<1x16x512xf32>,
      %c0_73 = arith.constant 0 : index
      %c0_74 = arith.constant 0 : index
      %75 = vector.load %arg10[%c0_73, %c0_74] : memref<16x1xf32, #tpu.memory_space<vmem>>, vector<16x1xf32>
      %cst_75 = arith.constant dense<0.000000e+00> : vector<16xf32>
      %76 = vector.multi_reduction <add>, %70, %cst_75 [1] : vector<16x512xf32> to vector<16xf32>
      %77 = vector.shape_cast %76 : vector<16xf32> to vector<16x1xf32>
      %78 = arith.addf %75, %77 : vector<16x1xf32>
      %c0_76 = arith.constant 0 : index
      %c0_77 = arith.constant 0 : index
      %79 = vector.load %arg10[%c0_76, %c0_77] : memref<16x1xf32, #tpu.memory_space<vmem>>, vector<16x1xf32>
      tpu.vector_store %arg10[%c0_76, %c0_77], %78 {strides = array<i32>} : memref<16x1xf32, #tpu.memory_space<vmem>>, vector<16x1xf32>,
    }
    %c2_i32_29 = arith.constant 2 : i32
    %c0_30 = arith.constant 0 : index
    %c0_31 = arith.constant 0 : index
    %25 = vector.load %arg10[%c0_30, %c0_31] : memref<16x1xf32, #tpu.memory_space<vmem>>, vector<16x1xf32>
    %cst_32 = arith.constant 9.765625E-4 : f32
    %26 = vector.broadcast %cst_32 : f32 to vector<16x1xf32>
    %27 = arith.mulf %25, %26 : vector<16x1xf32>
    %cst_33 = arith.constant 0.000000e+00 : f32
    %28 = vector.broadcast %cst_33 : f32 to vector<16x1xf32>
    %c0_34 = arith.constant 0 : index
    %c0_35 = arith.constant 0 : index
    %29 = vector.load %arg10[%c0_34, %c0_35] : memref<16x1xf32, #tpu.memory_space<vmem>>, vector<16x1xf32>
    tpu.vector_store %arg10[%c0_34, %c0_35], %28 {strides = array<i32>} : memref<16x1xf32, #tpu.memory_space<vmem>>, vector<16x1xf32>,
    %c0_i32_36 = arith.constant 0 : i32
    %c2_i32_37 = arith.constant 2 : i32
    %30 = arith.addi %c0_i32_36, %c2_i32_37 : i32
    %c1_i32_38 = arith.constant 1 : i32
    scf.for %arg11 = %c0_i32_36 to %30 step %c1_i32_38  : i32 {
      %c1_i32_52 = arith.constant 1 : i32
      %43 = arith.muli %arg11, %c1_i32_52 : i32
      %c0_i32_53 = arith.constant 0 : i32
      %44 = arith.addi %c0_i32_53, %43 : i32
      %45 = arith.index_cast %44 : i32 to index
      %c0_54 = arith.constant 0 : index
      %c0_55 = arith.constant 0 : index
      %46 = vector.load %arg9[%45, %c0_54, %c0_55] : memref<2x16x512xf32, #tpu.memory_space<vmem>>, vector<1x16x512xf32>
      %47 = vector.shape_cast %46 : vector<1x16x512xf32> to vector<16x512xf32>
      %48 = vector.broadcast %27 : vector<16x1xf32> to vector<16x512xf32>
      %49 = arith.subf %47, %48 : vector<16x512xf32>
      %c0_56 = arith.constant 0 : index
      %c0_57 = arith.constant 0 : index
      %50 = vector.load %arg10[%c0_56, %c0_57] : memref<16x1xf32, #tpu.memory_space<vmem>>, vector<16x1xf32>
      %51 = arith.mulf %49, %49 : vector<16x512xf32>
      %cst_58 = arith.constant dense<0.000000e+00> : vector<16xf32>
      %52 = vector.multi_reduction <add>, %51, %cst_58 [1] : vector<16x512xf32> to vector<16xf32>
      %53 = vector.shape_cast %52 : vector<16xf32> to vector<16x1xf32>
      %54 = arith.addf %50, %53 : vector<16x1xf32>
      %c0_59 = arith.constant 0 : index
      %c0_60 = arith.constant 0 : index
      %55 = vector.load %arg10[%c0_59, %c0_60] : memref<16x1xf32, #tpu.memory_space<vmem>>, vector<16x1xf32>
      tpu.vector_store %arg10[%c0_59, %c0_60], %54 {strides = array<i32>} : memref<16x1xf32, #tpu.memory_space<vmem>>, vector<16x1xf32>,
    }
    %c2_i32_39 = arith.constant 2 : i32
    %c0_40 = arith.constant 0 : index
    %c0_41 = arith.constant 0 : index
    %31 = vector.load %arg5[%c0_40, %c0_41] : memref<16x1xf32, #tpu.memory_space<vmem>>, vector<16x1xf32>
    %c0_42 = arith.constant 0 : index
    %c0_43 = arith.constant 0 : index
    %32 = vector.load %arg10[%c0_42, %c0_43] : memref<16x1xf32, #tpu.memory_space<vmem>>, vector<16x1xf32>
    %cst_44 = arith.constant 9.765625E-4 : f32
    %33 = vector.broadcast %cst_44 : f32 to vector<16x1xf32>
    %34 = arith.mulf %32, %33 : vector<16x1xf32>
    %cst_45 = arith.constant 9.99999974E-6 : f32
    %35 = vector.broadcast %cst_45 : f32 to vector<16x1xf32>
    %36 = arith.addf %34, %35 : vector<16x1xf32>
    %37 = math.rsqrt %36 : vector<16x1xf32>
    %38 = arith.mulf %31, %37 : vector<16x1xf32>
    %c0_46 = arith.constant 0 : index
    %c0_47 = arith.constant 0 : index
    %39 = vector.load %arg6[%c0_46, %c0_47] : memref<16x1xf32, #tpu.memory_space<vmem>>, vector<16x1xf32>
    %40 = arith.mulf %27, %38 : vector<16x1xf32>
    %41 = arith.subf %39, %40 : vector<16x1xf32>
    %c0_i32_48 = arith.constant 0 : i32
    %c2_i32_49 = arith.constant 2 : i32
    %42 = arith.addi %c0_i32_48, %c2_i32_49 : i32
    %c1_i32_50 = arith.constant 1 : i32
    scf.for %arg11 = %c0_i32_48 to %42 step %c1_i32_50  : i32 {
      %c1_i32_52 = arith.constant 1 : i32
      %43 = arith.muli %arg11, %c1_i32_52 : i32
      %c0_i32_53 = arith.constant 0 : i32
      %44 = arith.addi %c0_i32_53, %43 : i32
      %45 = arith.index_cast %44 : i32 to index
      %c0_54 = arith.constant 0 : index
      %c0_55 = arith.constant 0 : index
      %46 = vector.load %arg9[%45, %c0_54, %c0_55] : memref<2x16x512xf32, #tpu.memory_space<vmem>>, vector<1x16x512xf32>
      %47 = vector.shape_cast %46 : vector<1x16x512xf32> to vector<16x512xf32>
      %48 = vector.broadcast %38 : vector<16x1xf32> to vector<16x512xf32>
      %49 = arith.mulf %47, %48 : vector<16x512xf32>
      %50 = vector.broadcast %41 : vector<16x1xf32> to vector<16x512xf32>
      %51 = arith.addf %49, %50 : vector<16x512xf32>
      %52 = arith.index_cast %44 : i32 to index
      %c0_56 = arith.constant 0 : index
      %c0_57 = arith.constant 0 : index
      %53 = vector.load %arg0[%52, %c0_56, %c0_57] : memref<2x16x512xf32, #tpu.memory_space<vmem>>, vector<1x16x512xf32>
      %54 = vector.shape_cast %53 : vector<1x16x512xf32> to vector<16x512xf32>
      %55 = arith.addf %51, %54 : vector<16x512xf32>
      %cst_58 = arith.constant 0.000000e+00 : f32
      %56 = vector.broadcast %cst_58 : f32 to vector<16x512xf32>
      %57 = arith.maximumf %55, %56 : vector<16x512xf32>
      %58 = arith.index_cast %44 : i32 to index
      %c0_59 = arith.constant 0 : index
      %c0_60 = arith.constant 0 : index
      %59 = vector.load %arg7[%58, %c0_59, %c0_60] : memref<2x16x512xf32, #tpu.memory_space<vmem>>, vector<1x16x512xf32>
      %60 = vector.shape_cast %59 : vector<1x16x512xf32> to vector<16x512xf32>
      %61 = vector.shape_cast %57 : vector<16x512xf32> to vector<1x16x512xf32>
      tpu.vector_store %arg7[%58, %c0_59, %c0_60], %61 {strides = array<i32>} : memref<2x16x512xf32, #tpu.memory_space<vmem>>, vector<1x16x512xf32>,
    }
    %c2_i32_51 = arith.constant 2 : i32
    return
  }
}

</mosaic_0001>

<bundles_post_ra>
// kernel: tpu_custom_call.1
= control target key start
LH: loop header
LB: loop body
LE: loop exit
PB: predicated region body
PF: predicated region fallthrough
CT: control target
= control target key end

     0   :  { %12 = vsyncpa [#allocation6], 0  ;;  %s1940_s0 = inlined_call_operand.hbm [shape: f32[2,16,512], index: 0, kind: input, shape index: {}]   ;;  %s1941_s1 = inlined_call_operand.vmem [shape: bf16[3,16,16], index: 1, kind: input, shape index: {}]   ;;  %s1942_s2 = inlined_call_operand.vmem [shape: bf16[3,16,16], index: 2, kind: input, shape index: {}]   ;;  %s1943_s3 = inlined_call_operand.vmem [shape: f32[16,1], index: 3, kind: input, shape index: {}]   ;;  %s1944_s4 = inlined_call_operand.vmem [shape: f32[16,1], index: 4, kind: input, shape index: {}]   ;;  %s1945_s5 = inlined_call_operand.vmem [shape: f32[16,1], index: 5, kind: input, shape index: {}]   ;;  %s1946_s6 = inlined_call_operand.vmem [shape: f32[16,1], index: 6, kind: input, shape index: {}]   ;;  %s1947_s7 = inlined_call_operand.hbm [shape: f32[2,16,512], index: 7, kind: output, shape index: {}]  }
   0x1   :  { %13 = vsyncpa [#allocation7], 0  ;;  %s1585_s24 = smov [#allocation5]  }
   0x2   :  { %s19_s25 = sshll.u32 %s1585_s24, 4  ;;  %s20_s25 = int_to_ptr.vmem [resolvable:$true] %s19_s25 }
   0x3   :  { %s1509_s26 = scalar_lea.vmem %s20_s25, 2048  ;;  %p1514_p1 = scmp.lt.s32.totalorder %s20_s25, %s20_s25 }
   0x4   :  { %p1510_p0 = scmp.ne.s32.totalorder %s20_s25, %s1509_s26  ;;  %p1515_p2 = scmp.lt.s32.totalorder %s1509_s26, %s1509_s26 }
   0x6   :  { %p1516_p3 = por %p1515_p2, %p1514_p1 }
   0x8   :  { %p1517_p4 = pnand %p1516_p3, %p1510_p0 }
   0xa   :  { %1520 = shalt.err (!%p1517_p4)
}
   0xb   :  { %s1586_s27 = smov 512   ;;  %s1587_s28 = smov 32  }
   0xc   :  { %25 = dma.hbm_to_vmem [thread:$0]  %s1940_s0, 2048, %s20_s25, [#allocation6], %s1586_s27, %s1586_s27, %s1587_s28  }
   0xd   :  { %1561 = dma.done.wait [#allocation6], 2048  }
   0xe   :  { %1562 = vsyncadd [#allocation6], 4294965248  ;;  %vm44_vm0 = vcmask 11264   ;;  %vm49_vm1 = vcmask 7168   ;;  %v1588_v0 = vmov 0   ;;  %v1589_v1 = vmov 0.0  }
   0xf   :  { %42 = vst [vmem:[#allocation2] sm:$0xff] %v1588_v0  ;;  %46 = vst [vmem:[#allocation2 + $0x14] sm:$0xff] %v1588_v0  ;;  %s1652_s8 = smov 0  }
  0x10   :  { %45 = vst.msk [vmem:[#allocation2 + $0x10] sm:$0xf] %vm44_vm0, %v1588_v0  ;;  %48 = vst.msk [vmem:[#allocation2 + $0x24] sm:$0xf] %vm44_vm0, %v1588_v0 }
  0x11   :  { %50 = vst.msk [vmem:[#allocation4] sm:$0xff] %vm49_vm1, %v1589_v1  ;;  %51 = vst.msk [vmem:[#allocation4 + $0x8] sm:$0xff] %vm49_vm1, %v1589_v1 }
  0x12 LB: > { %s1400_s0 = sshll.u32 %s1567_s8, 6  ;;  %s1590_s10 = smov 1   ;;  %vm115_vm2 = vcmask 1043464   ;;  %vm116_vm3 = vcmask 1047556   ;;  %vm103_vm5 = vcmask 1043456   ;;  %vm120_vm6 = vcmask 3072   ;;  %s1567_s8 = sphi %s1652_s8, %s57_s8  }
  0x13   : > { %s60_s9 = scalar_lea.vmem [#allocation5], %s1400_s0  ;;  %vm1660_vm4 = vmor %vm116_vm3, %vm115_vm2  ;;  %v1591_v28 = vmov 0   ;;  %s1592_s11 = smov 127   ;;  %vm172_vm7 = vcmask 1039360   ;;  %v1477_v41 = vld [vmem:[%s1941_s1 + $0x8] sm:$0xff]   ;;  %vm181_vm8 = vcmask 130048  }
  0x14   : > { %v65_v2 = vld [vmem:[%s60_s9 + $0x20] sm:$0xff]  ;;  %v66_v3 = vld [vmem:[%s60_s9 + $0x28] sm:$0xff]  ;;  %v67_v7 = vld [vmem:[%s60_s9 + $0x30] sm:$0xff]  ;;  %217 = vmatprep.mubr.bf16.mxu0 %v1591_v28  ;;  %260 = vmatprep.mubr.bf16.mxu1 %v1591_v28  ;;  %s1593_s12 = smov 126   ;;  %vm387_vm9 = vcmask 1031168   ;;  %s1707_s19 = scalar_lea.vmem [#allocation3], %s1400_s0 }
  0x15   : > { %v61_v4 = vld [vmem:[%s60_s9] sm:$0xff]  ;;  %v1403_v5 = vpack.c.bf16 %v66_v3, %v65_v2  ;;  %v62_v6 = vld [vmem:[%s60_s9 + $0x8] sm:$0xff]  ;;  %v68_v8 = vld [vmem:[%s60_s9 + $0x38] sm:$0xff]  ;;  %s57_s8 = sadd.s32 1, %s1567_s8  }
  0x16   : > { %v1401_v9 = vpack.c.bf16 %v62_v6, %v61_v4  ;;  %v63_v10 = vld [vmem:[%s60_s9 + $0x10] sm:$0xff]  ;;  %v64_v11 = vld [vmem:[%s60_s9 + $0x18] sm:$0xff]  ;;  %v1404_v12 = vpack.c.bf16 %v68_v8, %v67_v7  ;;  %v1478_v49 = vld [vmem:[%s1941_s1] sm:$0xff]   ;;  %p54_p5 = scmp.ge.s32.totalorder %s57_s8, 2  }
  0x17   : > { %93 = vrot.lane.b32.xlu1 %v1403_v5, %s1590_s10  ;;  %v1402_v13 = vpack.c.bf16 %v64_v11, %v63_v10  ;;  %v1479_v54 = vld [vmem:[%s1941_s1 + $0x10] sm:$0xff]   ;;  %s1730_s20 = smov (%p54_p5), 0  }
  0x18   : > { %89 = vrot.lane.b32.xlu0 %v1401_v9, %s1590_s10 }
  0x1b   : > { %95 = vrot.lane.b32.xlu1 %v1404_v12, %s1590_s10 }
  0x1c   : > { %91 = vrot.lane.b32.xlu0 %v1402_v13, %s1590_s10 }
  0x89   : > { %v94_v14 = vpop.permute.xlu1 %93 }
  0x8a   : > { %v99_v16 = vrot.slane %v94_v14, 4  ;;  %v90_v17 = vpop.permute.xlu0 %89 }
  0x8b   : > { %v97_v18 = vrot.slane %v90_v17, 4 }
  0x8c   : > { %v106_v19 = vsel %vm49_vm1, %v99_v16, %v94_v14 }
  0x8d   : > { %122 = vst.msk [vmem:[#allocation2 + $0x14] sm:$0xff] %vm1660_vm4, %v106_v19  ;;  %v102_v20 = vsel %vm49_vm1, %v97_v18, %v90_v17  ;;  %v96_v21 = vpop.permute.xlu1 %95 }
  0x8e   : > { %118 = vst.msk [vmem:[#allocation2] sm:$0xff] %vm1660_vm4, %v102_v20  ;;  %v100_v22 = vrot.slane %v96_v21, 4  ;;  %v92_v23 = vpop.permute.xlu0 %91 }
  0x8f   : > { %v98_v24 = vrot.slane %v92_v23, 4 }
  0x90   : > { %v107_v25 = vsel %vm103_vm5, %v99_v16, %v100_v22  ;;  %124 = vst.msk [vmem:[#allocation2 + $0x24] sm:$0xf] %vm120_vm6, %v100_v22 }
  0x91   : > { %v108_v26 = vsel %vm49_vm1, %v107_v25, %v96_v21  ;;  %v104_v27 = vsel %vm103_vm5, %v97_v18, %v98_v24  ;;  %121 = vst.msk [vmem:[#allocation2 + $0x10] sm:$0xf] %vm120_vm6, %v98_v24 }
  0x92   : > { %v105_v29 = vsel %vm49_vm1, %v104_v27, %v92_v23 }
  0x93   : > { %v1354_v30 = vcombine.low %v105_v29, %v108_v26  ;;  %v1355_v32 = vcombine.high %v105_v29, %v108_v26 }
  0x95   : > { %v1473_v31 = vld [vmem:[#allocation2 + $0x4] ss:$20 sps:$4 sm:$0xff]   ;;  %166 = vrot.lane.b32.xlu1 %v1354_v30, %s1592_s11  ;;  %v1475_v33 = vld [vmem:[#allocation2] ss:$20 sps:$4 sm:$0xff]  }
  0x96   : > { %164 = vrot.lane.b32.xlu0 %v1473_v31, %s1592_s11 }
  0x98   : > { %v1476_v34 = vld [vmem:[#allocation2 + $0x10] ss:$20 sps:$4 sm:$0xff]  }
  0x99   : > { %168 = vrot.lane.b32.xlu1 %v1355_v32, %s1592_s11 }
  0x9a   : > { %162 = vrot.lane.b32.xlu0 %v1475_v33, %s1592_s11 }
  0x9d   : > { %379 = vrot.lane.b32.xlu1 %v1473_v31, %s1593_s12 }
  0x9e   : > { %170 = vrot.lane.b32.xlu0 %v1476_v34, %s1592_s11 }
  0xa1   : > { %377 = vrot.lane.b32.xlu1 %v1475_v33, %s1593_s12 }
  0xa2   : > { %381 = vrot.lane.b32.xlu0 %v1354_v30, %s1593_s12 }
  0xa5   : > { %385 = vrot.lane.b32.xlu1 %v1476_v34, %s1593_s12 }
  0xa6   : > { %383 = vrot.lane.b32.xlu0 %v1355_v32, %s1593_s12 }
 0x107   : > { %v167_v35 = vpop.permute.xlu1 %166 }
 0x108   : > { %v165_v36 = vpop.permute.xlu0 %164 }
 0x109   : > { %v174_v37 = vsel %vm172_vm7, %v165_v36, %v167_v35 }
 0x10a   : > { %199 = vmatprep.subr.bf16.mxu0 %v174_v37 }
 0x10b   : > { %v169_v38 = vpop.permute.xlu1 %168 }
 0x10c   : > { %v163_v39 = vpop.permute.xlu0 %162  ;;  %v175_v45 = vsel %vm172_vm7, %v167_v35, %v169_v38 }
 0x10d   : > { %v173_v40 = vsel %vm172_vm7, %v163_v39, %v165_v36 }
 0x10e   : > { %200 = vmatpush1.bf16.msra.mxu0 %v173_v40  ;;  %v503_v40 = vld [vmem:[#allocation4] sm:$0xff] }
 0x10f   : > { %v380_v42 = vpop.permute.xlu1 %379  ;;  %297 = vmatprep.subr.bf16.mxu0 %v1473_v31 }
 0x110   : > { %v171_v43 = vpop.permute.xlu0 %170 }
 0x111   : > { %1357 = vmatmul.mubr.msk.bf16.vlgmr.msra.gmra.mxu0 %vm181_vm8, %v1477_v41  ;;  %v176_v44 = vsel %vm172_vm7, %v169_v38, %v171_v43  ;;  %v504_v43 = vld [vmem:[#allocation4 + $0x8] sm:$0xff] }
 0x112   : > { %242 = vmatprep.subr.bf16.mxu1 %v176_v44  ;;  %298 = vmatpush1.bf16.msra.mxu0 %v1475_v33 }
 0x113   : > { %v378_v46 = vpop.permute.xlu1 %377  ;;  %243 = vmatpush1.bf16.msra.mxu1 %v175_v45  ;;  %315 = vmatprep.mubr.bf16.mxu0 %v1591_v28 }
 0x114   : > { %v382_v47 = vpop.permute.xlu0 %381  ;;  %340 = vmatprep.subr.bf16.mxu1 %v1355_v32  ;;  %v388_v52 = vsel %vm387_vm9, %v378_v46, %v380_v42 }
 0x115   : > { %v389_v48 = vsel %vm387_vm9, %v380_v42, %v382_v47 }
 0x116   : > { %1358 = vmatmul.mubr.msk.bf16.vlgmr.msra.gmra.mxu1 %vm181_vm8, %v1477_v41  ;;  %413 = vmatprep.subr.bf16.mxu0 %v389_v48 }
 0x117   : > { %341 = vmatpush1.bf16.msra.mxu1 %v1354_v30  ;;  %358 = vmatprep.mubr.bf16.mxu1 %v1591_v28  ;;  %v386_v51 = vpop.permute.xlu1 %385 }
 0x118   : > { %v384_v50 = vpop.permute.xlu0 %383 }
 0x119   : > { %1360 = vmatmul.mubr.msk.bf16.vlgmr.msra.gmra.mxu0 %vm181_vm8, %v1478_v49  ;;  %v391_v53 = vsel %vm387_vm9, %v384_v50, %v386_v51  ;;  %v390_v55 = vsel %vm387_vm9, %v382_v47, %v384_v50 }
 0x11a   : > { %414 = vmatpush1.bf16.msra.mxu0 %v388_v52  ;;  %456 = vmatprep.subr.bf16.mxu1 %v391_v53 }
 0x11b   : > { %431 = vmatprep.mubr.bf16.mxu0 %v1591_v28 }
 0x11e   : > { %1361 = vmatmul.mubr.msk.bf16.vlgmr.msra.gmra.mxu1 %vm181_vm8, %v1478_v49 }
 0x11f   : > { %457 = vmatpush1.bf16.msra.mxu1 %v390_v55  ;;  %474 = vmatprep.mubr.bf16.mxu1 %v1591_v28 }
 0x121   : > { %1365 = vmatmul.mubr.msk.bf16.vlgmr.msra.gmra.mxu0 %vm181_vm8, %v1479_v54 }
 0x126   : > { %1366 = vmatmul.mubr.msk.bf16.vlgmr.msra.gmra.mxu1 %vm181_vm8, %v1479_v54 }
 0x1d1   : > { %v219_v56 = vpop.f32.mrf.mxu0 }
 0x1d3   : > { %v221_v57 = vpop.f32.mrf.mxu0 }
 0x1d5   : > { %v223_v58 = vpop.f32.mrf.mxu0 }
 0x1d6   : > { %v262_v59 = vpop.f32.mrf.mxu1 }
 0x1d7   : > { %v225_v60 = vpop.f32.mrf.mxu0 }
 0x1d8   : > { %v264_v61 = vpop.f32.mrf.mxu1 }
 0x1d9   : > { %v317_v62 = vpop.f32.mrf.mxu0 }
 0x1da   : > { %v266_v63 = vpop.f32.mrf.mxu1  ;;  %v318_v6 = vadd.f32 %v317_v62, %v219_v56 }
 0x1db   : > { %v319_v0 = vpop.f32.mrf.mxu0 }
 0x1dc   : > { %v268_v2 = vpop.f32.mrf.mxu1  ;;  %v320_v9 = vadd.f32 %v319_v0, %v221_v57 }
 0x1dd   : > { %v321_v3 = vpop.f32.mrf.mxu0 }
 0x1de   : > { %v360_v4 = vpop.f32.mrf.mxu1  ;;  %v322_v13 = vadd.f32 %v321_v3, %v223_v58 }
 0x1df   : > { %v323_v5 = vpop.f32.mrf.mxu0  ;;  %v361_v17 = vadd.f32 %v360_v4, %v262_v59 }
 0x1e0   : > { %v362_v7 = vpop.f32.mrf.mxu1  ;;  %v324_v19 = vadd.f32 %v323_v5, %v225_v60 }
 0x1e1   : > { %v433_v8 = vpop.f32.mrf.mxu0  ;;  %v363_v23 = vadd.f32 %v362_v7, %v264_v61 }
 0x1e2   : > { %v364_v10 = vpop.f32.mrf.mxu1  ;;  %v485_v11 = vadd.f32 %v433_v8, %v318_v6 }
 0x1e3   : > { %v435_v12 = vpop.f32.mrf.mxu0  ;;  %v365_v28 = vadd.f32 %v364_v10, %v266_v63 }
 0x1e4   : > { %495 = vst [vmem:[%s1707_s19] sm:$0xff] %v485_v11  ;;  %v366_v14 = vpop.f32.mrf.mxu1  ;;  %v486_v16 = vadd.f32 %v435_v12, %v320_v9 }
 0x1e5   : > { %v437_v18 = vpop.f32.mrf.mxu0  ;;  %v367_v33 = vadd.f32 %v366_v14, %v268_v2 }
 0x1e6   : > { %496 = vst [vmem:[%s1707_s19 + $0x8] sm:$0xff] %v486_v16  ;;  %v505_v20 = vadd.f32 %v486_v16, %v485_v11  ;;  %v489_v21 = vadd.f32 %v437_v18, %v322_v13  ;;  %v476_v22 = vpop.f32.mrf.mxu1 }
 0x1e7   : > { %v487_v24 = vadd.f32 %v476_v22, %v361_v17  ;;  %v439_v25 = vpop.f32.mrf.mxu0 }
 0x1e8   : > { %499 = vst [vmem:[%s1707_s19 + $0x20] sm:$0xff] %v489_v21  ;;  %v490_v26 = vadd.f32 %v439_v25, %v324_v19  ;;  %v478_v27 = vpop.f32.mrf.mxu1 }
 0x1e9   : > { %497 = vst [vmem:[%s1707_s19 + $0x10] sm:$0xff] %v487_v24  ;;  %v506_v29 = vadd.f32 %v505_v20, %v487_v24  ;;  %v488_v30 = vadd.f32 %v478_v27, %v363_v23 }
 0x1ea   : > { %500 = vst [vmem:[%s1707_s19 + $0x28] sm:$0xff] %v490_v26  ;;  %v510_v31 = vadd.f32 %v490_v26, %v489_v21  ;;  %v480_v32 = vpop.f32.mrf.mxu1 }
 0x1eb   : > { %498 = vst [vmem:[%s1707_s19 + $0x18] sm:$0xff] %v488_v30  ;;  %v491_v34 = vadd.f32 %v480_v32, %v365_v28  ;;  %v507_v35 = vadd.f32 %v506_v29, %v488_v30 }
 0x1ec   : > { %v482_v36 = vpop.f32.mrf.mxu1 }
 0x1ed   : > { %501 = vst [vmem:[%s1707_s19 + $0x30] sm:$0xff] %v491_v34  ;;  %v511_v37 = vadd.f32 %v510_v31, %v491_v34  ;;  %v492_v38 = vadd.f32 %v482_v36, %v367_v33  ;;  %508 = vadd.xlane.f32.xlu0 %v507_v35 }
 0x1ef   : > { %502 = vst [vmem:[%s1707_s19 + $0x38] sm:$0xff] %v492_v38  ;;  %v512_v39 = vadd.f32 %v511_v37, %v492_v38 }
 0x1f1   : > { %513 = vadd.xlane.f32.xlu1 %v512_v39 }
 0x276   : > { %v509_v41 = vpop.xlane.xlu0 %508 }
 0x277   : > { %v515_v42 = vadd.f32 %v509_v41, %v503_v40 }
 0x279   : > { %517 = vst.msk [vmem:[#allocation4] sm:$0xff] %vm49_vm1, %v515_v42  ;;  %56 = sbr.rel (!%p54_p5) target bundleno = 18 (0x12), region = 99 }
 0x27a   : > { %v514_v44 = vpop.xlane.xlu1 %513 }
 0x27b   : > { %v516_v45 = vadd.f32 %v514_v44, %v504_v43 }
 0x27d   : > { %518 = vst.msk [vmem:[#allocation4 + $0x8] sm:$0xff] %vm49_vm1, %v516_v45 }
 0x280   :  { %v519_v46 = vld [vmem:[#allocation4] sm:$0xff] }
 0x281   :  { %v1722_v48 = vmul.f32 0.0009765625, %v519_v46  ;;  %523 = vst.msk [vmem:[#allocation4] sm:$0xff] %vm49_vm1, %v1589_v1 }
 0x284   :  { %v520_v47 = vld [vmem:[#allocation4 + $0x8] sm:$0xff] }
 0x285   :  { %v1726_v49 = vmul.f32 0.0009765625, %v520_v47  ;;  %524 = vst.msk [vmem:[#allocation4 + $0x8] sm:$0xff] %vm49_vm1, %v1589_v1 }
 0x286 LB: > { %v1594_v50 = vmov 0   ;;  %s1406_s1 = sshll.u32 %s1571_s20, 6  ;;  %s530_s20 = sadd.s32 1, %s1571_s20   ;;  %s1571_s20 = sphi %s1730_s20, %s530_s20  }
 0x287   : > { %1480 = vset.pattern.permute.xlu0 %v1594_v50  ;;  %s533_s21 = scalar_lea.vmem [#allocation3], %s1406_s1  ;;  %p527_p6 = scmp.ge.s32.totalorder %s530_s20, 2  }
 0x288   : > { %544 = vperm.xlu0 %1480, %v1722_v48   ;;  %v534_v51 = vld [vmem:[%s533_s21] sm:$0xff]  ;;  %v535_v52 = vld [vmem:[%s533_s21 + $0x8] sm:$0xff]  ;;  %v536_v53 = vld [vmem:[%s533_s21 + $0x10] sm:$0xff] }
 0x289   : > { %v537_v57 = vld [vmem:[%s533_s21 + $0x18] sm:$0xff]  ;;  %v538_v58 = vld [vmem:[%s533_s21 + $0x20] sm:$0xff]  ;;  %v539_v59 = vld [vmem:[%s533_s21 + $0x28] sm:$0xff] }
 0x28a   : > { %v540_v60 = vld [vmem:[%s533_s21 + $0x30] sm:$0xff]  ;;  %v541_v2 = vld [vmem:[%s533_s21 + $0x38] sm:$0xff]  ;;  %v560_v21 = vld [vmem:[#allocation4] sm:$0xff] }
 0x28b   :  { %v584_v33 = vld [vmem:[%s1943_s3] sm:$0xff] (%p527_p6)  ;;  %v585_v34 = vld [vmem:[%s1943_s3 + $0x8] sm:$0xff] (%p527_p6)  ;;  %s1779_s3 = smov (%p527_p6), 0  }
 0x28c   : > { %549 = vperm.xlu0 %1480, %v1726_v49   ;;  %v561_v24 = vld [vmem:[#allocation4 + $0x8] sm:$0xff]  ;;  %v1758_v38 = vld [vmem:[%s1944_s4] sm:$0xff] (%p527_p6)  ;;  %v1769_v41 = vld [vmem:[%s1944_s4 + $0x8] sm:$0xff] (%p527_p6) }
 0x303   : > { %v545_v54 = vpop.permute.xlu0 %544 }
 0x304   : > { %v552_v55 = vsub.f32 %v534_v51, %v545_v54  ;;  %v553_v56 = vsub.f32 %v535_v52, %v545_v54  ;;  %v554_v61 = vsub.f32 %v536_v53, %v545_v54  ;;  %v555_v3 = vsub.f32 %v537_v57, %v545_v54 }
 0x306   : > { %v562_v62 = vmul.f32 %v552_v55, %v552_v55  ;;  %v563_v63 = vmul.f32 %v553_v56, %v553_v56  ;;  %v564_v7 = vmul.f32 %v554_v61, %v554_v61  ;;  %v565_v12 = vmul.f32 %v555_v3, %v555_v3 }
 0x307   : > { %v550_v0 = vpop.permute.xlu0 %549 }
 0x308   : > { %v556_v4 = vsub.f32 %v538_v58, %v550_v0  ;;  %v557_v5 = vsub.f32 %v539_v59, %v550_v0  ;;  %v558_v6 = vsub.f32 %v540_v60, %v550_v0  ;;  %v570_v8 = vadd.f32 %v563_v63, %v562_v62 }
 0x309   : > { %v559_v9 = vsub.f32 %v541_v2, %v550_v0 }
 0x30a   : > { %v566_v10 = vmul.f32 %v556_v4, %v556_v4  ;;  %v567_v11 = vmul.f32 %v557_v5, %v557_v5  ;;  %v571_v13 = vadd.f32 %v570_v8, %v564_v7  ;;  %v568_v14 = vmul.f32 %v558_v6, %v558_v6 }
 0x30b   : > { %v569_v18 = vmul.f32 %v559_v9, %v559_v9 }
 0x30c   : > { %v575_v16 = vadd.f32 %v567_v11, %v566_v10  ;;  %v572_v17 = vadd.f32 %v571_v13, %v565_v12 }
 0x30e   : > { %v576_v19 = vadd.f32 %v575_v16, %v568_v14  ;;  %573 = vadd.xlane.f32.xlu1 %v572_v17 }
 0x310   : > { %v577_v20 = vadd.f32 %v576_v19, %v569_v18 }
 0x312   : > { %578 = vadd.xlane.f32.xlu1 %v577_v20 }
 0x397   : > { %v574_v22 = vpop.xlane.xlu1 %573 }
 0x398   : > { %v580_v23 = vadd.f32 %v574_v22, %v560_v21 }
 0x39a   : > { %582 = vst.msk [vmem:[#allocation4] sm:$0xff] %vm49_vm1, %v580_v23 }
 0x39b   : > { %v579_v25 = vpop.xlane.xlu1 %578  ;;  %529 = sbr.rel (!%p527_p6) target bundleno = 646 (0x286), region = 110 }
 0x39c   : > { %v581_v26 = vadd.f32 %v579_v25, %v561_v24 }
 0x39e   : > { %583 = vst.msk [vmem:[#allocation4 + $0x8] sm:$0xff] %vm49_vm1, %v581_v26 }
 0x3a1   :  { %v586_v27 = vld [vmem:[#allocation4] sm:$0xff] }
 0x3a2   :  { %v588_v28 = vmul.f32 0.0009765625, %v586_v27  ;;  %602 = vst.msk [vmem:[#allocation4] sm:$0xff] %vm49_vm1, %v1589_v1 }
 0x3a4   :  { %v590_v31 = vadd.f32 1e-05, %v588_v28 }
 0x3a5   :  { %v587_v29 = vld [vmem:[#allocation4 + $0x8] sm:$0xff] }
 0x3a6   :  { %v589_v30 = vmul.f32 0.0009765625, %v587_v29  ;;  %603 = vst.msk [vmem:[#allocation4 + $0x8] sm:$0xff] %vm49_vm1, %v1589_v1  ;;  %1481 = vrsqrt.f32 %v590_v31 }
 0x3a8   :  { %v591_v32 = vadd.f32 1e-05, %v589_v30 }
 0x3aa   :  { %1483 = vrsqrt.f32 %v591_v32 }
 0x3b3   :  { %v1482_v35 = vpop.eup %1481 }
 0x3b4   :  { %v1753_v37 = vmul.f32 %v1482_v35, %v584_v33 }
 0x3b6   :  { %v1764_v40 = vmul.f32 %v1753_v37, %v1722_v48 }
 0x3b7   :  { %v1484_v36 = vpop.eup %1483 }
 0x3b8   :  { %v1760_v39 = vmul.f32 %v1484_v36, %v585_v34  ;;  %v600_v43 = vsub.f32 %v1758_v38, %v1764_v40 }
 0x3ba   :  { %v1773_v42 = vmul.f32 %v1760_v39, %v1726_v49 }
 0x3bc   :  { %v601_v44 = vsub.f32 %v1769_v41, %v1773_v42 }
 0x3bd LB: > { %v1595_v45 = vmov 0   ;;  %s1407_s4 = sshll.u32 %s1575_s3, 6  ;;  %s1596_s9 = smov 1   ;;  %s1575_s3 = sphi %s1779_s3, %s609_s3  }
 0x3be   : > { %1486 = vset.pattern.permute.xlu1 %v1595_v45  ;;  %1485 = vset.pattern.permute.xlu0 %v1595_v45  ;;  %s1797_s0 = scalar_lea.vmem [#allocation3], %s1407_s4  ;;  %s1597_s10 = smov 127  }
 0x3bf   : > { %641 = vperm.xlu1 %1486, %v600_v43   ;;  %623 = vperm.xlu0 %1485, %v1753_v37   ;;  %v613_v46 = vld [vmem:[%s1797_s0] sm:$0xff]  ;;  %v614_v47 = vld [vmem:[%s1797_s0 + $0x8] sm:$0xff]  ;;  %v615_v48 = vld [vmem:[%s1797_s0 + $0x10] sm:$0xff]  ;;  %s1598_s11 = smov 126   ;;  %s609_s3 = sadd.s32 1, %s1575_s3  }
 0x3c0   : > { %813 = vmatprep.mubr.bf16.mxu0 %v1595_v45  ;;  %856 = vmatprep.mubr.bf16.mxu1 %v1595_v45  ;;  %v616_v49 = vld [vmem:[%s1797_s0 + $0x18] sm:$0xff]  ;;  %v617_v56 = vld [vmem:[%s1797_s0 + $0x20] sm:$0xff]  ;;  %v618_v57 = vld [vmem:[%s1797_s0 + $0x28] sm:$0xff]  ;;  %p606_p7 = scmp.ge.s32.totalorder %s609_s3, 2  }
 0x3c1   : > { %v619_v58 = vld [vmem:[%s1797_s0 + $0x30] sm:$0xff]  ;;  %v620_v59 = vld [vmem:[%s1797_s0 + $0x38] sm:$0xff]  ;;  %s1867_s18 = smov (%p606_p7), 0  }
 0x3c3   : > { %646 = vperm.xlu1 %1486, %v601_v44   ;;  %628 = vperm.xlu0 %1485, %v1760_v39  }
 0x43a   : > { %v642_v50 = vpop.permute.xlu1 %641  ;;  %v624_v51 = vpop.permute.xlu0 %623 }
 0x43b   : > { %v631_v52 = vmul.f32 %v624_v51, %v613_v46  ;;  %v632_v53 = vmul.f32 %v624_v51, %v614_v47  ;;  %v633_v54 = vmul.f32 %v624_v51, %v615_v48  ;;  %v634_v55 = vmul.f32 %v624_v51, %v616_v49 }
 0x43d   : > { %v651_v60 = vadd.f32 %v642_v50, %v633_v54  ;;  %v652_v61 = vadd.f32 %v642_v50, %v634_v55  ;;  %v649_v62 = vadd.f32 %v642_v50, %v631_v52  ;;  %v650_v63 = vadd.f32 %v642_v50, %v632_v53 }
 0x43e   : > { %v629_v0 = vpop.permute.xlu0 %628  ;;  %v647_v6 = vpop.permute.xlu1 %646 }
 0x43f   : > { %v635_v2 = vmul.f32 %v629_v0, %v617_v56  ;;  %v636_v3 = vmul.f32 %v629_v0, %v618_v57  ;;  %v637_v4 = vmul.f32 %v629_v0, %v619_v58  ;;  %v638_v5 = vmul.f32 %v629_v0, %v620_v59  ;;  %v1491_v59 = vld [vmem:[%s1942_s2 + $0x8] sm:$0xff]  }
 0x440   : > { %v659_v7 = vmax.f32 %v651_v60, 0.0  ;;  %v660_v8 = vmax.f32 %v652_v61, 0.0  ;;  %v657_v9 = vmax.f32 %v649_v62, 0.0  ;;  %v658_v10 = vmax.f32 %v650_v63, 0.0 }
 0x441   : > { %v655_v11 = vadd.f32 %v647_v6, %v637_v4  ;;  %v656_v12 = vadd.f32 %v647_v6, %v638_v5  ;;  %v653_v13 = vadd.f32 %v647_v6, %v635_v2  ;;  %v654_v14 = vadd.f32 %v647_v6, %v636_v3  ;;  %v1492_v3 = vld [vmem:[%s1942_s2] sm:$0xff]  }
 0x442   : > { %v1409_v16 = vpack.c.bf16 %v660_v8, %v659_v7  ;;  %v1408_v17 = vpack.c.bf16 %v658_v10, %v657_v9  ;;  %v1493_v8 = vld [vmem:[%s1942_s2 + $0x10] sm:$0xff]  }
 0x443   : > { %v663_v18 = vmax.f32 %v655_v11, 0.0  ;;  %v664_v19 = vmax.f32 %v656_v12, 0.0  ;;  %v661_v20 = vmax.f32 %v653_v13, 0.0  ;;  %v662_v21 = vmax.f32 %v654_v14, 0.0 }
 0x444   : > { %687 = vrot.lane.b32.xlu1 %v1409_v16, %s1596_s9  ;;  %685 = vrot.lane.b32.xlu0 %v1408_v17, %s1596_s9 }
 0x445   : > { %v1411_v22 = vpack.c.bf16 %v664_v19, %v663_v18  ;;  %v1410_v23 = vpack.c.bf16 %v662_v21, %v661_v20 }
 0x448   : > { %691 = vrot.lane.b32.xlu1 %v1411_v22, %s1596_s9  ;;  %689 = vrot.lane.b32.xlu0 %v1410_v23, %s1596_s9 }
 0x4b6   : > { %v688_v24 = vpop.permute.xlu1 %687  ;;  %v686_v25 = vpop.permute.xlu0 %685 }
 0x4b7   : > { %v694_v26 = vrot.slane %v688_v24, 4  ;;  %v693_v27 = vrot.slane %v686_v25, 4 }
 0x4b9   : > { %717 = vst.msk [vmem:[#allocation2 + $0x10] sm:$0xf] %vm120_vm6, %v694_v26  ;;  %v698_v28 = vsel %vm49_vm1, %v693_v27, %v686_v25  ;;  %v700_v29 = vsel %vm103_vm5, %v693_v27, %v694_v26 }
 0x4ba   : > { %v701_v30 = vsel %vm49_vm1, %v700_v29, %v688_v24  ;;  %714 = vst.msk [vmem:[#allocation2] sm:$0xff] %vm1660_vm4, %v698_v28  ;;  %v692_v31 = vpop.permute.xlu1 %691  ;;  %v690_v32 = vpop.permute.xlu0 %689 }
 0x4bb   : > { %v696_v33 = vrot.slane %v692_v31, 4  ;;  %v695_v34 = vrot.slane %v690_v32, 4 }
 0x4bd   : > { %720 = vst.msk [vmem:[#allocation2 + $0x24] sm:$0xf] %vm120_vm6, %v696_v33  ;;  %v702_v35 = vsel %vm49_vm1, %v695_v34, %v690_v32  ;;  %v703_v36 = vsel %vm103_vm5, %v695_v34, %v696_v33 }
 0x4be   : > { %v704_v46 = vsel %vm49_vm1, %v703_v36, %v692_v31  ;;  %718 = vst.msk [vmem:[#allocation2 + $0x14] sm:$0xff] %vm1660_vm4, %v702_v35 }
 0x4bf   : > { %v1381_v47 = vcombine.low %v701_v30, %v704_v46  ;;  %v1382_v48 = vcombine.high %v701_v30, %v704_v46 }
 0x4c1   : > { %762 = vrot.lane.b32.xlu1 %v1381_v47, %s1597_s10 }
 0x4c4   : > { %v1490_v51 = vld [vmem:[#allocation2 + $0x10] ss:$20 sps:$4 sm:$0xff]  }
 0x4c5   : > { %v1487_v49 = vld [vmem:[#allocation2 + $0x4] ss:$20 sps:$4 sm:$0xff]   ;;  %764 = vrot.lane.b32.xlu1 %v1382_v48, %s1597_s10  ;;  %v1489_v50 = vld [vmem:[#allocation2] ss:$20 sps:$4 sm:$0xff]  }
 0x4c6   : > { %760 = vrot.lane.b32.xlu0 %v1487_v49, %s1597_s10 }
 0x4c9   : > { %975 = vrot.lane.b32.xlu1 %v1487_v49, %s1598_s11 }
 0x4ca   : > { %758 = vrot.lane.b32.xlu0 %v1489_v50, %s1597_s10 }
 0x4cd   : > { %973 = vrot.lane.b32.xlu1 %v1489_v50, %s1598_s11 }
 0x4ce   : > { %766 = vrot.lane.b32.xlu0 %v1490_v51, %s1597_s10 }
 0x4d1   : > { %981 = vrot.lane.b32.xlu1 %v1490_v51, %s1598_s11 }
 0x4d2   : > { %977 = vrot.lane.b32.xlu0 %v1381_v47, %s1598_s11 }
 0x4d6   : > { %979 = vrot.lane.b32.xlu0 %v1382_v48, %s1598_s11 }
 0x533   : > { %v763_v52 = vpop.permute.xlu1 %762 }
 0x537   : > { %v765_v53 = vpop.permute.xlu1 %764 }
 0x538   : > { %v761_v54 = vpop.permute.xlu0 %760  ;;  %v771_v62 = vsel %vm172_vm7, %v763_v52, %v765_v53 }
 0x539   : > { %v770_v55 = vsel %vm172_vm7, %v761_v54, %v763_v52 }
 0x53a   : > { %795 = vmatprep.subr.bf16.mxu0 %v770_v55 }
 0x53b   : > { %v976_v57 = vpop.permute.xlu1 %975 }
 0x53c   : > { %v759_v56 = vpop.permute.xlu0 %758 }
 0x53d   : > { %v769_v58 = vsel %vm172_vm7, %v759_v56, %v761_v54 }
 0x53e   : > { %796 = vmatpush1.bf16.msra.mxu0 %v769_v58 }
 0x53f   : > { %893 = vmatprep.subr.bf16.mxu0 %v1487_v49  ;;  %v974_v63 = vpop.permute.xlu1 %973 }
 0x540   : > { %v767_v60 = vpop.permute.xlu0 %766  ;;  %v984_v6 = vsel %vm387_vm9, %v974_v63, %v976_v57 }
 0x541   : > { %1384 = vmatmul.mubr.msk.bf16.vlgmr.msra.gmra.mxu0 %vm181_vm8, %v1491_v59  ;;  %v772_v61 = vsel %vm172_vm7, %v765_v53, %v767_v60 }
 0x542   : > { %838 = vmatprep.subr.bf16.mxu1 %v772_v61  ;;  %894 = vmatpush1.bf16.msra.mxu0 %v1489_v50 }
 0x543   : > { %839 = vmatpush1.bf16.msra.mxu1 %v771_v62  ;;  %911 = vmatprep.mubr.bf16.mxu0 %v1595_v45  ;;  %v982_v5 = vpop.permute.xlu1 %981 }
 0x544   : > { %936 = vmatprep.subr.bf16.mxu1 %v1382_v48  ;;  %v978_v0 = vpop.permute.xlu0 %977 }
 0x545   : > { %v985_v2 = vsel %vm387_vm9, %v976_v57, %v978_v0 }
 0x546   : > { %1385 = vmatmul.mubr.msk.bf16.vlgmr.msra.gmra.mxu1 %vm181_vm8, %v1491_v59  ;;  %1009 = vmatprep.subr.bf16.mxu0 %v985_v2  ;;  %v1097_v2 = vld [vmem:[#allocation4] sm:$0xff] }
 0x547   : > { %937 = vmatpush1.bf16.msra.mxu1 %v1381_v47  ;;  %954 = vmatprep.mubr.bf16.mxu1 %v1595_v45 }
 0x548   : > { %v980_v4 = vpop.permute.xlu0 %979 }
 0x549   : > { %v987_v7 = vsel %vm387_vm9, %v980_v4, %v982_v5  ;;  %1387 = vmatmul.mubr.msk.bf16.vlgmr.msra.gmra.mxu0 %vm181_vm8, %v1492_v3  ;;  %v986_v9 = vsel %vm387_vm9, %v978_v0, %v980_v4  ;;  %v1098_v5 = vld [vmem:[#allocation4 + $0x8] sm:$0xff] }
 0x54a   : > { %1010 = vmatpush1.bf16.msra.mxu0 %v984_v6  ;;  %1052 = vmatprep.subr.bf16.mxu1 %v987_v7 }
 0x54b   : > { %1027 = vmatprep.mubr.bf16.mxu0 %v1595_v45 }
 0x54e   : > { %1388 = vmatmul.mubr.msk.bf16.vlgmr.msra.gmra.mxu1 %vm181_vm8, %v1492_v3 }
 0x54f   : > { %1053 = vmatpush1.bf16.msra.mxu1 %v986_v9  ;;  %1070 = vmatprep.mubr.bf16.mxu1 %v1595_v45 }
 0x551   : > { %1392 = vmatmul.mubr.msk.bf16.vlgmr.msra.gmra.mxu0 %vm181_vm8, %v1493_v8 }
 0x556   : > { %1393 = vmatmul.mubr.msk.bf16.vlgmr.msra.gmra.mxu1 %vm181_vm8, %v1493_v8 }
 0x601   : > { %v815_v10 = vpop.f32.mrf.mxu0 }
 0x603   : > { %v817_v11 = vpop.f32.mrf.mxu0 }
 0x605   : > { %v819_v12 = vpop.f32.mrf.mxu0 }
 0x606   : > { %v858_v13 = vpop.f32.mrf.mxu1 }
 0x607   : > { %v821_v14 = vpop.f32.mrf.mxu0 }
 0x608   : > { %v860_v16 = vpop.f32.mrf.mxu1 }
 0x609   : > { %v913_v17 = vpop.f32.mrf.mxu0 }
 0x60a   : > { %v862_v18 = vpop.f32.mrf.mxu1  ;;  %v914_v45 = vadd.f32 %v913_v17, %v815_v10 }
 0x60b   : > { %v915_v19 = vpop.f32.mrf.mxu0 }
 0x60c   : > { %v864_v20 = vpop.f32.mrf.mxu1  ;;  %v916_v26 = vadd.f32 %v915_v19, %v817_v11 }
 0x60d   : > { %v917_v21 = vpop.f32.mrf.mxu0 }
 0x60e   : > { %v956_v22 = vpop.f32.mrf.mxu1  ;;  %v918_v30 = vadd.f32 %v917_v21, %v819_v12 }
 0x60f   : > { %v919_v23 = vpop.f32.mrf.mxu0  ;;  %v957_v33 = vadd.f32 %v956_v22, %v858_v13 }
 0x610   : > { %v958_v24 = vpop.f32.mrf.mxu1  ;;  %v920_v35 = vadd.f32 %v919_v23, %v821_v14 }
 0x611   : > { %v1029_v25 = vpop.f32.mrf.mxu0  ;;  %v959_v48 = vadd.f32 %v958_v24, %v860_v16 }
 0x612   : > { %v1081_v27 = vadd.f32 %v1029_v25, %v914_v45  ;;  %v960_v28 = vpop.f32.mrf.mxu1 }
 0x613   : > { %v1031_v29 = vpop.f32.mrf.mxu0  ;;  %v961_v53 = vadd.f32 %v960_v28, %v862_v18 }
 0x614   : > { %1089 = vst [vmem:[%s1797_s0] sm:$0xff] %v1081_v27  ;;  %v1082_v31 = vadd.f32 %v1031_v29, %v916_v26  ;;  %v962_v32 = vpop.f32.mrf.mxu1 }
 0x615   : > { %v1033_v34 = vpop.f32.mrf.mxu0  ;;  %v963_v58 = vadd.f32 %v962_v32, %v864_v20 }
 0x616   : > { %1090 = vst [vmem:[%s1797_s0 + $0x8] sm:$0xff] %v1082_v31  ;;  %v1099_v36 = vadd.f32 %v1082_v31, %v1081_v27  ;;  %v1085_v46 = vadd.f32 %v1033_v34, %v918_v30  ;;  %v1072_v47 = vpop.f32.mrf.mxu1 }
 0x617   : > { %v1083_v49 = vadd.f32 %v1072_v47, %v957_v33  ;;  %v1035_v50 = vpop.f32.mrf.mxu0 }
 0x618   : > { %1093 = vst [vmem:[%s1797_s0 + $0x20] sm:$0xff] %v1085_v46  ;;  %v1086_v51 = vadd.f32 %v1035_v50, %v920_v35  ;;  %v1074_v52 = vpop.f32.mrf.mxu1 }
 0x619   : > { %1091 = vst [vmem:[%s1797_s0 + $0x10] sm:$0xff] %v1083_v49  ;;  %v1100_v54 = vadd.f32 %v1099_v36, %v1083_v49  ;;  %v1084_v55 = vadd.f32 %v1074_v52, %v959_v48 }
 0x61a   : > { %1094 = vst [vmem:[%s1797_s0 + $0x28] sm:$0xff] %v1086_v51  ;;  %v1104_v56 = vadd.f32 %v1086_v51, %v1085_v46  ;;  %v1076_v57 = vpop.f32.mrf.mxu1 }
 0x61b   : > { %1092 = vst [vmem:[%s1797_s0 + $0x18] sm:$0xff] %v1084_v55  ;;  %v1087_v59 = vadd.f32 %v1076_v57, %v961_v53  ;;  %v1101_v60 = vadd.f32 %v1100_v54, %v1084_v55 }
 0x61c   : > { %v1078_v61 = vpop.f32.mrf.mxu1 }
 0x61d   : > { %1095 = vst [vmem:[%s1797_s0 + $0x30] sm:$0xff] %v1087_v59  ;;  %v1105_v62 = vadd.f32 %v1104_v56, %v1087_v59  ;;  %v1088_v63 = vadd.f32 %v1078_v61, %v963_v58  ;;  %1102 = vadd.xlane.f32.xlu0 %v1101_v60 }
 0x61f   : > { %1096 = vst [vmem:[%s1797_s0 + $0x38] sm:$0xff] %v1088_v63  ;;  %v1106_v0 = vadd.f32 %v1105_v62, %v1088_v63 }
 0x621   : > { %1107 = vadd.xlane.f32.xlu1 %v1106_v0 }
 0x6a6   : > { %v1103_v3 = vpop.xlane.xlu0 %1102 }
 0x6a7   : > { %v1109_v4 = vadd.f32 %v1103_v3, %v1097_v2 }
 0x6a9   : > { %1111 = vst.msk [vmem:[#allocation4] sm:$0xff] %vm49_vm1, %v1109_v4  ;;  %608 = sbr.rel (!%p606_p7) target bundleno = 957 (0x3bd), region = 121 }
 0x6aa   : > { %v1108_v6 = vpop.xlane.xlu1 %1107 }
 0x6ab   : > { %v1110_v7 = vadd.f32 %v1108_v6, %v1098_v5 }
 0x6ad   : > { %1112 = vst.msk [vmem:[#allocation4 + $0x8] sm:$0xff] %vm49_vm1, %v1110_v7 }
 0x6b0   :  { %v1113_v8 = vld [vmem:[#allocation4] sm:$0xff] }
 0x6b1   :  { %v1859_v10 = vmul.f32 0.0009765625, %v1113_v8  ;;  %1117 = vst.msk [vmem:[#allocation4] sm:$0xff] %vm49_vm1, %v1589_v1 }
 0x6b4   :  { %v1114_v9 = vld [vmem:[#allocation4 + $0x8] sm:$0xff] }
 0x6b5   :  { %v1863_v11 = vmul.f32 0.0009765625, %v1114_v9  ;;  %1118 = vst.msk [vmem:[#allocation4 + $0x8] sm:$0xff] %vm49_vm1, %v1589_v1 }
 0x6b6 LB: > { %v1599_v15 = vmov 0   ;;  %s1412_s2 = sshll.u32 %s1579_s18, 6  ;;  %s1124_s18 = sadd.s32 1, %s1579_s18   ;;  %s1579_s18 = sphi %s1867_s18, %s1124_s18  }
 0x6b7   : > { %1494 = vset.pattern.permute.xlu0 %v1599_v15  ;;  %s1127_s19 = scalar_lea.vmem [#allocation3], %s1412_s2  ;;  %p1121_p8 = scmp.ge.s32.totalorder %s1124_s18, 2  }
 0x6b8   : > { %1138 = vperm.xlu0 %1494, %v1859_v10   ;;  %v1128_v37 = vld [vmem:[%s1127_s19] sm:$0xff]  ;;  %v1129_v38 = vld [vmem:[%s1127_s19 + $0x8] sm:$0xff]  ;;  %v1130_v39 = vld [vmem:[%s1127_s19 + $0x10] sm:$0xff] }
 0x6b9   : > { %v1131_v42 = vld [vmem:[%s1127_s19 + $0x18] sm:$0xff]  ;;  %v1132_v43 = vld [vmem:[%s1127_s19 + $0x20] sm:$0xff]  ;;  %v1133_v44 = vld [vmem:[%s1127_s19 + $0x28] sm:$0xff] }
 0x6ba   : > { %v1134_v12 = vld [vmem:[%s1127_s19 + $0x30] sm:$0xff]  ;;  %v1135_v18 = vld [vmem:[%s1127_s19 + $0x38] sm:$0xff]  ;;  %v1154_v35 = vld [vmem:[#allocation4] sm:$0xff] }
 0x6bb   :  { %v1178_v56 = vld [vmem:[%s1945_s5] sm:$0xff] (%p1121_p8)  ;;  %v1179_v57 = vld [vmem:[%s1945_s5 + $0x8] sm:$0xff] (%p1121_p8)  ;;  %s1912_s5 = smov (%p1121_p8), 0  }
 0x6bc   : > { %1143 = vperm.xlu0 %1494, %v1863_v11   ;;  %v1155_v47 = vld [vmem:[#allocation4 + $0x8] sm:$0xff]  ;;  %v1893_v62 = vld [vmem:[%s1946_s6] sm:$0xff] (%p1121_p8)  ;;  %v1898_v63 = vld [vmem:[%s1946_s6 + $0x8] sm:$0xff] (%p1121_p8) }
 0x733   : > { %v1139_v1 = vpop.permute.xlu0 %1138 }
 0x734   : > { %v1146_v40 = vsub.f32 %v1128_v37, %v1139_v1  ;;  %v1147_v41 = vsub.f32 %v1129_v38, %v1139_v1  ;;  %v1148_v13 = vsub.f32 %v1130_v39, %v1139_v1  ;;  %v1149_v19 = vsub.f32 %v1131_v42, %v1139_v1 }
 0x736   : > { %v1156_v14 = vmul.f32 %v1146_v40, %v1146_v40  ;;  %v1157_v16 = vmul.f32 %v1147_v41, %v1147_v41  ;;  %v1158_v23 = vmul.f32 %v1148_v13, %v1148_v13  ;;  %v1159_v27 = vmul.f32 %v1149_v19, %v1149_v19 }
 0x737   : > { %v1144_v17 = vpop.permute.xlu0 %1143 }
 0x738   : > { %v1150_v20 = vsub.f32 %v1132_v43, %v1144_v17  ;;  %v1151_v21 = vsub.f32 %v1133_v44, %v1144_v17  ;;  %v1152_v22 = vsub.f32 %v1134_v12, %v1144_v17  ;;  %v1164_v45 = vadd.f32 %v1157_v16, %v1156_v14 }
 0x739   : > { %v1153_v24 = vsub.f32 %v1135_v18, %v1144_v17 }
 0x73a   : > { %v1160_v25 = vmul.f32 %v1150_v20, %v1150_v20  ;;  %v1161_v26 = vmul.f32 %v1151_v21, %v1151_v21  ;;  %v1165_v28 = vadd.f32 %v1164_v45, %v1158_v23  ;;  %v1162_v29 = vmul.f32 %v1152_v22, %v1152_v22 }
 0x73b   : > { %v1163_v32 = vmul.f32 %v1153_v24, %v1153_v24 }
 0x73c   : > { %v1169_v30 = vadd.f32 %v1161_v26, %v1160_v25  ;;  %v1166_v31 = vadd.f32 %v1165_v28, %v1159_v27 }
 0x73e   : > { %v1170_v33 = vadd.f32 %v1169_v30, %v1162_v29  ;;  %1167 = vadd.xlane.f32.xlu1 %v1166_v31 }
 0x740   : > { %v1171_v34 = vadd.f32 %v1170_v33, %v1163_v32 }
 0x742   : > { %1172 = vadd.xlane.f32.xlu1 %v1171_v34 }
 0x7c7   : > { %v1168_v36 = vpop.xlane.xlu1 %1167 }
 0x7c8   : > { %v1174_v46 = vadd.f32 %v1168_v36, %v1154_v35 }
 0x7ca   : > { %1176 = vst.msk [vmem:[#allocation4] sm:$0xff] %vm49_vm1, %v1174_v46 }
 0x7cb   : > { %v1173_v48 = vpop.xlane.xlu1 %1172  ;;  %1123 = sbr.rel (!%p1121_p8) target bundleno = 1718 (0x6b6), region = 132 }
 0x7cc   : > { %v1175_v49 = vadd.f32 %v1173_v48, %v1155_v47 }
 0x7ce   : > { %1177 = vst.msk [vmem:[#allocation4 + $0x8] sm:$0xff] %vm49_vm1, %v1175_v49 }
 0x7d1   :  { %v1180_v50 = vld [vmem:[#allocation4] sm:$0xff] }
 0x7d2   :  { %v1182_v52 = vmul.f32 0.0009765625, %v1180_v50 }
 0x7d4   :  { %v1184_v54 = vadd.f32 1e-05, %v1182_v52 }
 0x7d5   :  { %v1181_v51 = vld [vmem:[#allocation4 + $0x8] sm:$0xff] }
 0x7d6   :  { %v1183_v53 = vmul.f32 0.0009765625, %v1181_v51  ;;  %1495 = vrsqrt.f32 %v1184_v54 }
 0x7d8   :  { %v1185_v55 = vadd.f32 1e-05, %v1183_v53 }
 0x7da   :  { %1497 = vrsqrt.f32 %v1185_v55 }
 0x7e3   :  { %v1496_v58 = vpop.eup %1495 }
 0x7e4   :  { %v1886_v60 = vmul.f32 %v1496_v58, %v1178_v56 }
 0x7e6   :  { %v1902_v0 = vmul.f32 %v1886_v60, %v1859_v10 }
 0x7e7   :  { %v1498_v59 = vpop.eup %1497 }
 0x7e8   :  { %v1888_v61 = vmul.f32 %v1498_v59, %v1179_v57  ;;  %v1194_v3 = vsub.f32 %v1893_v62, %v1902_v0 }
 0x7ea   :  { %v1906_v2 = vmul.f32 %v1888_v61, %v1863_v11 }
 0x7ec   :  { %v1195_v4 = vsub.f32 %v1898_v63, %v1906_v2 }
 0x7ed LB: > { %v1600_v5 = vmov 0   ;;  %s1926_s6 = sshll.u32 %s1583_s5, 6  ;;  %s1201_s5 = sadd.s32 1, %s1583_s5   ;;  %s1583_s5 = sphi %s1912_s5, %s1201_s5  }
 0x7ee   : > { %1500 = vset.pattern.permute.xlu1 %v1600_v5  ;;  %1499 = vset.pattern.permute.xlu0 %v1600_v5  ;;  %s1204_s29 = scalar_lea.vmem [#allocation3], %s1926_s6  ;;  %s1250_s30 = scalar_lea.vmem [#allocation5], %s1926_s6 }
 0x7ef   : > { %1233 = vperm.xlu1 %1500, %v1194_v3   ;;  %1215 = vperm.xlu0 %1499, %v1886_v60   ;;  %v1205_v6 = vld [vmem:[%s1204_s29] sm:$0xff]  ;;  %v1206_v7 = vld [vmem:[%s1204_s29 + $0x8] sm:$0xff]  ;;  %v1207_v8 = vld [vmem:[%s1204_s29 + $0x10] sm:$0xff]  ;;  %s1276_s8 = scalar_lea.vmem [#allocation8], %s1926_s6  ;;  %p1198_p9 = scmp.ge.s32.totalorder %s1201_s5, 2  }
 0x7f0   : > { %v1208_v9 = vld [vmem:[%s1204_s29 + $0x18] sm:$0xff]  ;;  %v1251_v1 = vld [vmem:[%s1250_s30] sm:$0xff]  ;;  %v1252_v40 = vld [vmem:[%s1250_s30 + $0x8] sm:$0xff]  ;;  %s1601_s3 = smov (%p1198_p9), [#allocation8]  }
 0x7f1   : > { %v1253_v41 = vld [vmem:[%s1250_s30 + $0x10] sm:$0xff]  ;;  %v1254_v42 = vld [vmem:[%s1250_s30 + $0x18] sm:$0xff]  ;;  %v1209_v43 = vld [vmem:[%s1204_s29 + $0x20] sm:$0xff]  ;;  %s1290_s4 = sshll.u32 (%p1198_p9), %s1601_s3, 4  ;;  %s1291_s4 = int_to_ptr.vmem [resolvable:$true] %s1290_s4 }
 0x7f2   : > { %v1210_v16 = vld [vmem:[%s1204_s29 + $0x28] sm:$0xff]  ;;  %v1211_v17 = vld [vmem:[%s1204_s29 + $0x30] sm:$0xff]  ;;  %v1212_v18 = vld [vmem:[%s1204_s29 + $0x38] sm:$0xff]  ;;  %s1521_s0 = scalar_lea.vmem (%p1198_p9), %s1291_s4, 2048  ;;  %p1526_p11 = scmp.lt.s32.totalorder (%p1198_p9), %s1291_s4, %s1291_s4 }
 0x7f3   : > { %1238 = vperm.xlu1 %1500, %v1195_v4   ;;  %1220 = vperm.xlu0 %1499, %v1888_v61   ;;  %v1255_v27 = vld [vmem:[%s1250_s30 + $0x20] sm:$0xff]  ;;  %v1256_v28 = vld [vmem:[%s1250_s30 + $0x28] sm:$0xff]  ;;  %v1257_v34 = vld [vmem:[%s1250_s30 + $0x30] sm:$0xff]  ;;  %p1522_p10 = scmp.ne.s32.totalorder (%p1198_p9), %s1291_s4, %s1521_s0  ;;  %p1527_p12 = scmp.lt.s32.totalorder (%p1198_p9), %s1521_s0, %s1521_s0 }
 0x7f4   : > { %v1258_v35 = vld [vmem:[%s1250_s30 + $0x38] sm:$0xff] }
 0x7f5   :  { %p1528_p13 = por (%p1198_p9), %p1527_p12, %p1526_p11 }
 0x7f7   :  { %p1529_p0 = pnand (%p1198_p9), %p1528_p13, %p1522_p10 }
 0x86a   : > { %v1216_v10 = vpop.permute.xlu0 %1215  ;;  %v1234_v11 = vpop.permute.xlu1 %1233 }
 0x86b   : > { %v1223_v15 = vmul.f32 %v1216_v10, %v1205_v6  ;;  %v1224_v37 = vmul.f32 %v1216_v10, %v1206_v7  ;;  %v1225_v38 = vmul.f32 %v1216_v10, %v1207_v8  ;;  %v1226_v39 = vmul.f32 %v1216_v10, %v1208_v9 }
 0x86d   : > { %v1241_v44 = vadd.f32 %v1234_v11, %v1223_v15  ;;  %v1242_v12 = vadd.f32 %v1234_v11, %v1224_v37  ;;  %v1243_v13 = vadd.f32 %v1234_v11, %v1225_v38  ;;  %v1244_v14 = vadd.f32 %v1234_v11, %v1226_v39 }
 0x86e   : > { %v1221_v19 = vpop.permute.xlu0 %1220  ;;  %v1239_v33 = vpop.permute.xlu1 %1238 }
 0x86f   : > { %v1259_v20 = vadd.f32 %v1251_v1, %v1241_v44  ;;  %v1260_v21 = vadd.f32 %v1252_v40, %v1242_v12  ;;  %v1261_v22 = vadd.f32 %v1253_v41, %v1243_v13  ;;  %v1262_v23 = vadd.f32 %v1254_v42, %v1244_v14 }
 0x870   : > { %v1227_v45 = vmul.f32 %v1221_v19, %v1209_v43  ;;  %v1228_v24 = vmul.f32 %v1221_v19, %v1210_v16  ;;  %v1229_v25 = vmul.f32 %v1221_v19, %v1211_v17  ;;  %v1230_v26 = vmul.f32 %v1221_v19, %v1212_v18 }
 0x871   : > { %v1267_v29 = vmax.f32 %v1259_v20, 0.0  ;;  %v1268_v30 = vmax.f32 %v1260_v21, 0.0  ;;  %v1269_v31 = vmax.f32 %v1261_v22, 0.0  ;;  %v1270_v32 = vmax.f32 %v1262_v23, 0.0 }
 0x872   : > { %v1245_v36 = vadd.f32 %v1239_v33, %v1227_v45  ;;  %v1246_v46 = vadd.f32 %v1239_v33, %v1228_v24  ;;  %v1247_v47 = vadd.f32 %v1239_v33, %v1229_v25  ;;  %v1248_v48 = vadd.f32 %v1239_v33, %v1230_v26 }
 0x873   : > { %1277 = vst [vmem:[%s1276_s8] sm:$0xff] %v1267_v29  ;;  %1278 = vst [vmem:[%s1276_s8 + $0x8] sm:$0xff] %v1268_v30 }
 0x874   : > { %1279 = vst [vmem:[%s1276_s8 + $0x10] sm:$0xff] %v1269_v31  ;;  %1280 = vst [vmem:[%s1276_s8 + $0x18] sm:$0xff] %v1270_v32  ;;  %v1263_v49 = vadd.f32 %v1255_v27, %v1245_v36  ;;  %v1264_v50 = vadd.f32 %v1256_v28, %v1246_v46  ;;  %v1265_v51 = vadd.f32 %v1257_v34, %v1247_v47 }
 0x875   : > { %v1266_v52 = vadd.f32 %v1258_v35, %v1248_v48  ;;  %1200 = sbr.rel (!%p1198_p9) target bundleno = 2029 (0x7ed), region = 143 }
 0x876   : > { %v1271_v53 = vmax.f32 %v1263_v49, 0.0  ;;  %v1272_v54 = vmax.f32 %v1264_v50, 0.0  ;;  %v1273_v55 = vmax.f32 %v1265_v51, 0.0 }
 0x877   : > { %v1274_v56 = vmax.f32 %v1266_v52, 0.0 }
 0x878   : > { %1281 = vst [vmem:[%s1276_s8 + $0x20] sm:$0xff] %v1271_v53  ;;  %1282 = vst [vmem:[%s1276_s8 + $0x28] sm:$0xff] %v1272_v54 }
 0x879   : > { %1283 = vst [vmem:[%s1276_s8 + $0x30] sm:$0xff] %v1273_v55  ;;  %1284 = vst [vmem:[%s1276_s8 + $0x38] sm:$0xff] %v1274_v56 }
 0x87a   :  { %1532 = shalt.err (!%p1529_p0)
}
 0x87b   :  { %1296 = dma.vmem_to_hbm [thread:$0]  %s1291_s4, 2048, %s1947_s7, [#allocation7], %s1586_s27, %s1586_s27, %s1587_s28  }
 0x87c   :  { %1563 = dma.done.wait [#allocation7], 2048  }
 0x87d   :  { %1564 = vsyncadd [#allocation7], 4294965248 }
 0x87e   :  { %1300 = vsyncpa [#allocation6], 1 }
 0x87f   :  { %1301 = vsyncpa [#allocation7], 1 }

</bundles_post_ra>
